<compile_context>
chip_gen: v5e
topology: v5e:2x2
jax: 0.10.0
libtpu: 0.0.40
codegen_flags: <defaults>
</compile_context>

<pallas_src>
import functools
import numpy as np
import jax
import jax.numpy as jnp
from jax import lax
from jax.experimental import pallas as pl
from jax.experimental.pallas import tpu as pltpu


def peer_kernel(x_ref, wsim_ref, down_ref, up_ref, o_ref,
                *, heads, num_keys, num_experts, mxu_dtype):
    x = x_ref[...]                                            # (TN, d) f32
    tn, d = x.shape
    nk = num_keys

    # Fused query-projection + product-key similarities: one lane-dense matmul.
    sims = jnp.dot(x.astype(mxu_dtype), wsim_ref[...],
                   preferred_element_type=jnp.float32)        # (TN, 2*H*nk)

    lane_iota = lax.broadcasted_iota(jnp.int32, (tn, nk), 1)

    # Separable top-1 per head: argmax over each product-key half.
    idx_parts = []
    score_parts = []
    for h in range(heads):
        sx = sims[:, h * nk:(h + 1) * nk]                     # (TN, nk)
        sy = sims[:, (heads + h) * nk:(heads + h + 1) * nk]   # (TN, nk)
        mx = jnp.max(sx, axis=-1, keepdims=True)
        ix = jnp.min(jnp.where(sx == mx, lane_iota, nk), axis=-1, keepdims=True)
        my = jnp.max(sy, axis=-1, keepdims=True)
        iy = jnp.min(jnp.where(sy == my, lane_iota, nk), axis=-1, keepdims=True)
        idx_parts.append(ix * nk + iy)                        # (TN, 1) int32
        score_parts.append(mx + my)                           # (TN, 1) f32

    idx_all = jnp.concatenate(idx_parts, axis=0)              # (H*TN, 1)
    score_all = jnp.concatenate(score_parts, axis=0)          # (H*TN, 1)

    # All heads' expert gathers fused into a single one-hot matmul (M = H*TN).
    e_iota = lax.broadcasted_iota(jnp.int32, (heads * tn, num_experts), 1)
    onehot = (e_iota == idx_all).astype(mxu_dtype)            # (H*TN, NE)
    wd_all = jnp.dot(onehot, down_ref[...],
                     preferred_element_type=jnp.float32)      # (H*TN, d)

    # Expert down-projection, exact GELU, ReLU(score) gating (all heads at once).
    x_rep = jnp.concatenate([x] * heads, axis=0)              # (H*TN, d)
    y = jnp.sum(x_rep * wd_all, axis=-1, keepdims=True)       # (H*TN, 1)
    g = 0.5 * y * (1.0 + lax.erf(y * (1.0 / np.sqrt(2.0))))
    gated = g * jnp.maximum(score_all, 0.0)                   # (H*TN, 1)

    # Up projection is linear in the gated one-hots -> one weighted multi-hot
    # (TN, NE) matmul against the up table covers every head.
    weighted = gated * onehot.astype(jnp.float32)             # (H*TN, NE)
    multihot = jnp.zeros((tn, num_experts), jnp.float32)
    for h in range(heads):
        multihot = multihot + weighted[h * tn:(h + 1) * tn]   # (TN, NE)

    out = jnp.dot(multihot.astype(mxu_dtype), up_ref[...],
                  preferred_element_type=jnp.float32)         # (TN, d)
    o_ref[...] = out.astype(o_ref.dtype)


def peer_forward(x, wq, keys, down_tab, up_tab, *, heads,
                 token_block=256, mxu_dtype=jnp.float32):
    b, n, d = x.shape
    nk = keys.shape[1]
    dk = keys.shape[-1]
    ne = down_tab.shape[0]
    N = b * n

    # Fold the query projection and both product-key halves into one
    # (d, 2*heads*nk) similarity matrix: column (p*heads + h)*nk + k is
    # wq[:, (p*heads+h)*dk : ...] @ keys[h, k, p, :].
    wq_r = wq.reshape(d, 2, heads, dk)                        # (d, p, h, dk)
    keys_r = jnp.transpose(keys, (2, 0, 3, 1))                # (p, h, dk, nk)
    w_sim = jnp.einsum('dphc,phck->dphk', wq_r, keys_r).reshape(d, 2 * heads * nk)

    w_sim = w_sim.astype(mxu_dtype)
    down_m = down_tab.astype(mxu_dtype)
    up_m = up_tab.astype(mxu_dtype)

    # Token tiling: big tiles fill the MXU and amortize per-grid-step overhead.
    if N <= token_block:
        tb, Np = N, N
    else:
        tb = token_block
        Np = pl.cdiv(N, tb) * tb

    xf = x.reshape(N, d)
    if Np != N:
        xf = jnp.pad(xf, ((0, Np - N), (0, 0)))               # zero rows -> zero output

    kern = functools.partial(peer_kernel, heads=heads, num_keys=nk,
                             num_experts=ne, mxu_dtype=mxu_dtype)

    itemsize = jnp.dtype(mxu_dtype).itemsize
    cost = pl.CostEstimate(
        flops=(2 * Np * d * (2 * heads * nk)        # sim matmul
               + 2 * heads * Np * ne * d            # stacked one-hot down gather
               + 2 * Np * ne * d),                  # multi-hot up matmul
        transcendentals=heads * Np,                 # erf per head per token
        bytes_accessed=(2 * Np * d * 4
                        + (w_sim.size + down_m.size + up_m.size) * itemsize),
    )

    out = pl.pallas_call(
        kern,
        out_shape=jax.ShapeDtypeStruct((Np, d), x.dtype),
        grid_spec=pltpu.PrefetchScalarGridSpec(
            num_scalar_prefetch=0,
            grid=(Np // tb,),
            in_specs=[
                pl.BlockSpec((tb, d), lambda i: (i, 0)),
                pl.BlockSpec(w_sim.shape, lambda i: (0, 0)),
                pl.BlockSpec(down_m.shape, lambda i: (0, 0)),
                pl.BlockSpec(up_m.shape, lambda i: (0, 0)),
            ],
            out_specs=pl.BlockSpec((tb, d), lambda i: (i, 0)),
        ),
        compiler_params=pltpu.CompilerParams(dimension_semantics=("parallel",)),
        cost_estimate=cost,
    )(xf, w_sim, down_m, up_m)

    return out[:N].reshape(b, n, d)


def peer_reference(x, wq, keys, down_tab, up_tab, *, heads, topk):
    """Pure-JAX reference mirroring the PyTorch forward (default config)."""
    b, n, d = x.shape
    nk = keys.shape[1]
    q = x @ wq                                                # (b, n, 2*h*dk)
    dk = keys.shape[-1]
    q = q.reshape(b, n, 2, heads, dk).transpose(2, 0, 1, 3, 4)  # p b n h d
    sim = jnp.einsum('pbnhd,hkpd->pbnhk', q, keys)
    sx, ix = lax.top_k(sim[0], topk)
    sy, iy = lax.top_k(sim[1], topk)
    all_scores = (sx[..., :, None] + sy[..., None, :]).reshape(b, n, heads, topk * topk)
    all_indices = (ix[..., :, None] * nk + iy[..., None, :]).reshape(b, n, heads, topk * topk)
    scores, pk_idx = lax.top_k(all_scores, 1)
    indices = jnp.take_along_axis(all_indices, pk_idx, axis=-1)  # (b, n, h, 1)
    wd = down_tab[indices]                                       # (b, n, h, 1, d)
    wu = up_tab[indices]
    y = jnp.einsum('bnd,bnhkd->bnhk', x, wd)
    y = jax.nn.gelu(y, approximate=False)
    y = y * jax.nn.relu(scores)
    return jnp.einsum('bnhk,bnhkd->bnd', y, wu)


if __name__ == "__main__":
    # Small config consistent with the PEER module defaults.
    dim = 32
    heads = 4
    num_experts = 256            # num_keys = sqrt(num_experts) = 16
    num_experts_per_head = 4     # product_key_topk = 4, final per-head top-k = 1
    dim_key = dim // 2
    num_keys = int(np.sqrt(num_experts))
    b, n = 2, 8

    key = jax.random.PRNGKey(0)
    kx, kq, kk, kd, ku = jax.random.split(key, 5)
    x = jax.random.normal(kx, (b, n, dim), jnp.float32)
    wq = jax.random.normal(kq, (dim, dim_key * heads * 2), jnp.float32) * (1.0 / np.sqrt(dim))
    keys = jax.random.normal(kk, (heads, num_keys, 2, dim_key), jnp.float32) * 0.02
    down_tab = jax.random.normal(kd, (num_experts, dim), jnp.float32)
    up_tab = jax.random.normal(ku, (num_experts, dim), jnp.float32)

    out = peer_forward(x, wq, keys, down_tab, up_tab,
                       heads=heads, token_block=256)
    out = jax.block_until_ready(out)

    ref = peer_reference(x, wq, keys, down_tab, up_tab,
                         heads=heads, topk=num_experts_per_head)
    np.testing.assert_allclose(np.asarray(out), np.asarray(ref), rtol=1e-4, atol=1e-4)
    print("KERNEL_OK")
</pallas_src>

<mosaic_0001>
module attributes {stable_mosaic.version = 11 : i64} {
  func.func @peer_kernel(%arg0: i32, %arg1: memref<16x32xf32, #tpu.memory_space<vmem>>, %arg2: memref<32x128xf32, #tpu.memory_space<vmem>>, %arg3: memref<256x32xf32, #tpu.memory_space<vmem>>, %arg4: memref<256x32xf32, #tpu.memory_space<vmem>>, %arg5: memref<16x32xf32, #tpu.memory_space<vmem>>) attributes {dimension_semantics = [#tpu.dimension_semantics<parallel>], iteration_bounds = array<i64: 1>, scalar_prefetch = 0 : i64, scratch_operands = 0 : i64, tpu.core_type = #tpu.core_type<tc>, window_params = [{transform_indices = @transform_0, window_bounds = array<i64: 16, 32>}, {pipeline_mode = #tpu.pipeline_mode<synchronous>, transform_indices = @transform_1, window_bounds = array<i64: 32, 128>}, {pipeline_mode = #tpu.pipeline_mode<synchronous>, transform_indices = @transform_2, window_bounds = array<i64: 256, 32>}, {pipeline_mode = #tpu.pipeline_mode<synchronous>, transform_indices = @transform_3, window_bounds = array<i64: 256, 32>}, {transform_indices = @transform_4, window_bounds = array<i64: 16, 32>}]} {
    %c0 = arith.constant 0 : index
    %c0_0 = arith.constant 0 : index
    %0 = vector.load %arg1[%c0, %c0_0] : memref<16x32xf32, #tpu.memory_space<vmem>>, vector<16x32xf32>
    %c0_1 = arith.constant 0 : index
    %c0_2 = arith.constant 0 : index
    %1 = vector.load %arg2[%c0_1, %c0_2] : memref<32x128xf32, #tpu.memory_space<vmem>>, vector<32x128xf32>
    %cst = arith.constant dense<0.000000e+00> : vector<16x128xf32>
    %2 = tpu.matmul %0, %1, %cst {dimension_numbers = #tpu.dot_dimension_numbers<[1], [0], [0], [1], [0, 0, 1, 1], [], []>} : vector<16x32xf32>, vector<32x128xf32>, vector<16x128xf32> -> vector<16x128xf32>
    %3 = tpu.iota {dimensions = array<i32: 1>} : vector<16x16xi32>
    %4 = vector.extract_strided_slice %2 {offsets = [0, 0], sizes = [16, 16], strides = [1, 1]} : vector<16x128xf32> to vector<16x16xf32>
    %5 = vector.extract_strided_slice %2 {offsets = [0, 64], sizes = [16, 16], strides = [1, 1]} : vector<16x128xf32> to vector<16x16xf32>
    %cst_3 = arith.constant dense<0xFF800000> : vector<16xf32>
    %6 = vector.multi_reduction <maximumf>, %4, %cst_3 [1] : vector<16x16xf32> to vector<16xf32>
    %7 = vector.shape_cast %6 : vector<16xf32> to vector<16x1xf32>
    %8 = vector.broadcast %7 : vector<16x1xf32> to vector<16x16xf32>
    %9 = arith.cmpf oeq, %4, %8 : vector<16x16xf32>
    %c16_i32 = arith.constant 16 : i32
    %10 = vector.broadcast %c16_i32 : i32 to vector<16x16xi32>
    %11 = arith.select %9, %3, %10 : vector<16x16xi1>, vector<16x16xi32>
    %cst_4 = arith.constant dense<2147483647> : vector<16xi32>
    %12 = vector.multi_reduction <minsi>, %11, %cst_4 [1] : vector<16x16xi32> to vector<16xi32>
    %13 = vector.shape_cast %12 : vector<16xi32> to vector<16x1xi32>
    %cst_5 = arith.constant dense<0xFF800000> : vector<16xf32>
    %14 = vector.multi_reduction <maximumf>, %5, %cst_5 [1] : vector<16x16xf32> to vector<16xf32>
    %15 = vector.shape_cast %14 : vector<16xf32> to vector<16x1xf32>
    %16 = vector.broadcast %15 : vector<16x1xf32> to vector<16x16xf32>
    %17 = arith.cmpf oeq, %5, %16 : vector<16x16xf32>
    %c16_i32_6 = arith.constant 16 : i32
    %18 = vector.broadcast %c16_i32_6 : i32 to vector<16x16xi32>
    %19 = arith.select %17, %3, %18 : vector<16x16xi1>, vector<16x16xi32>
    %cst_7 = arith.constant dense<2147483647> : vector<16xi32>
    %20 = vector.multi_reduction <minsi>, %19, %cst_7 [1] : vector<16x16xi32> to vector<16xi32>
    %21 = vector.shape_cast %20 : vector<16xi32> to vector<16x1xi32>
    %c16_i32_8 = arith.constant 16 : i32
    %22 = vector.broadcast %c16_i32_8 : i32 to vector<16x1xi32>
    %23 = arith.muli %13, %22 : vector<16x1xi32>
    %24 = arith.addi %23, %21 : vector<16x1xi32>
    %25 = arith.addf %7, %15 : vector<16x1xf32>
    %26 = vector.extract_strided_slice %2 {offsets = [0, 16], sizes = [16, 16], strides = [1, 1]} : vector<16x128xf32> to vector<16x16xf32>
    %27 = vector.extract_strided_slice %2 {offsets = [0, 80], sizes = [16, 16], strides = [1, 1]} : vector<16x128xf32> to vector<16x16xf32>
    %cst_9 = arith.constant dense<0xFF800000> : vector<16xf32>
    %28 = vector.multi_reduction <maximumf>, %26, %cst_9 [1] : vector<16x16xf32> to vector<16xf32>
    %29 = vector.shape_cast %28 : vector<16xf32> to vector<16x1xf32>
    %30 = vector.broadcast %29 : vector<16x1xf32> to vector<16x16xf32>
    %31 = arith.cmpf oeq, %26, %30 : vector<16x16xf32>
    %c16_i32_10 = arith.constant 16 : i32
    %32 = vector.broadcast %c16_i32_10 : i32 to vector<16x16xi32>
    %33 = arith.select %31, %3, %32 : vector<16x16xi1>, vector<16x16xi32>
    %cst_11 = arith.constant dense<2147483647> : vector<16xi32>
    %34 = vector.multi_reduction <minsi>, %33, %cst_11 [1] : vector<16x16xi32> to vector<16xi32>
    %35 = vector.shape_cast %34 : vector<16xi32> to vector<16x1xi32>
    %cst_12 = arith.constant dense<0xFF800000> : vector<16xf32>
    %36 = vector.multi_reduction <maximumf>, %27, %cst_12 [1] : vector<16x16xf32> to vector<16xf32>
    %37 = vector.shape_cast %36 : vector<16xf32> to vector<16x1xf32>
    %38 = vector.broadcast %37 : vector<16x1xf32> to vector<16x16xf32>
    %39 = arith.cmpf oeq, %27, %38 : vector<16x16xf32>
    %c16_i32_13 = arith.constant 16 : i32
    %40 = vector.broadcast %c16_i32_13 : i32 to vector<16x16xi32>
    %41 = arith.select %39, %3, %40 : vector<16x16xi1>, vector<16x16xi32>
    %cst_14 = arith.constant dense<2147483647> : vector<16xi32>
    %42 = vector.multi_reduction <minsi>, %41, %cst_14 [1] : vector<16x16xi32> to vector<16xi32>
    %43 = vector.shape_cast %42 : vector<16xi32> to vector<16x1xi32>
    %c16_i32_15 = arith.constant 16 : i32
    %44 = vector.broadcast %c16_i32_15 : i32 to vector<16x1xi32>
    %45 = arith.muli %35, %44 : vector<16x1xi32>
    %46 = arith.addi %45, %43 : vector<16x1xi32>
    %47 = arith.addf %29, %37 : vector<16x1xf32>
    %48 = vector.extract_strided_slice %2 {offsets = [0, 32], sizes = [16, 16], strides = [1, 1]} : vector<16x128xf32> to vector<16x16xf32>
    %49 = vector.extract_strided_slice %2 {offsets = [0, 96], sizes = [16, 16], strides = [1, 1]} : vector<16x128xf32> to vector<16x16xf32>
    %cst_16 = arith.constant dense<0xFF800000> : vector<16xf32>
    %50 = vector.multi_reduction <maximumf>, %48, %cst_16 [1] : vector<16x16xf32> to vector<16xf32>
    %51 = vector.shape_cast %50 : vector<16xf32> to vector<16x1xf32>
    %52 = vector.broadcast %51 : vector<16x1xf32> to vector<16x16xf32>
    %53 = arith.cmpf oeq, %48, %52 : vector<16x16xf32>
    %c16_i32_17 = arith.constant 16 : i32
    %54 = vector.broadcast %c16_i32_17 : i32 to vector<16x16xi32>
    %55 = arith.select %53, %3, %54 : vector<16x16xi1>, vector<16x16xi32>
    %cst_18 = arith.constant dense<2147483647> : vector<16xi32>
    %56 = vector.multi_reduction <minsi>, %55, %cst_18 [1] : vector<16x16xi32> to vector<16xi32>
    %57 = vector.shape_cast %56 : vector<16xi32> to vector<16x1xi32>
    %cst_19 = arith.constant dense<0xFF800000> : vector<16xf32>
    %58 = vector.multi_reduction <maximumf>, %49, %cst_19 [1] : vector<16x16xf32> to vector<16xf32>
    %59 = vector.shape_cast %58 : vector<16xf32> to vector<16x1xf32>
    %60 = vector.broadcast %59 : vector<16x1xf32> to vector<16x16xf32>
    %61 = arith.cmpf oeq, %49, %60 : vector<16x16xf32>
    %c16_i32_20 = arith.constant 16 : i32
    %62 = vector.broadcast %c16_i32_20 : i32 to vector<16x16xi32>
    %63 = arith.select %61, %3, %62 : vector<16x16xi1>, vector<16x16xi32>
    %cst_21 = arith.constant dense<2147483647> : vector<16xi32>
    %64 = vector.multi_reduction <minsi>, %63, %cst_21 [1] : vector<16x16xi32> to vector<16xi32>
    %65 = vector.shape_cast %64 : vector<16xi32> to vector<16x1xi32>
    %c16_i32_22 = arith.constant 16 : i32
    %66 = vector.broadcast %c16_i32_22 : i32 to vector<16x1xi32>
    %67 = arith.muli %57, %66 : vector<16x1xi32>
    %68 = arith.addi %67, %65 : vector<16x1xi32>
    %69 = arith.addf %51, %59 : vector<16x1xf32>
    %70 = vector.extract_strided_slice %2 {offsets = [0, 48], sizes = [16, 16], strides = [1, 1]} : vector<16x128xf32> to vector<16x16xf32>
    %71 = vector.extract_strided_slice %2 {offsets = [0, 112], sizes = [16, 16], strides = [1, 1]} : vector<16x128xf32> to vector<16x16xf32>
    %cst_23 = arith.constant dense<0xFF800000> : vector<16xf32>
    %72 = vector.multi_reduction <maximumf>, %70, %cst_23 [1] : vector<16x16xf32> to vector<16xf32>
    %73 = vector.shape_cast %72 : vector<16xf32> to vector<16x1xf32>
    %74 = vector.broadcast %73 : vector<16x1xf32> to vector<16x16xf32>
    %75 = arith.cmpf oeq, %70, %74 : vector<16x16xf32>
    %c16_i32_24 = arith.constant 16 : i32
    %76 = vector.broadcast %c16_i32_24 : i32 to vector<16x16xi32>
    %77 = arith.select %75, %3, %76 : vector<16x16xi1>, vector<16x16xi32>
    %cst_25 = arith.constant dense<2147483647> : vector<16xi32>
    %78 = vector.multi_reduction <minsi>, %77, %cst_25 [1] : vector<16x16xi32> to vector<16xi32>
    %79 = vector.shape_cast %78 : vector<16xi32> to vector<16x1xi32>
    %cst_26 = arith.constant dense<0xFF800000> : vector<16xf32>
    %80 = vector.multi_reduction <maximumf>, %71, %cst_26 [1] : vector<16x16xf32> to vector<16xf32>
    %81 = vector.shape_cast %80 : vector<16xf32> to vector<16x1xf32>
    %82 = vector.broadcast %81 : vector<16x1xf32> to vector<16x16xf32>
    %83 = arith.cmpf oeq, %71, %82 : vector<16x16xf32>
    %c16_i32_27 = arith.constant 16 : i32
    %84 = vector.broadcast %c16_i32_27 : i32 to vector<16x16xi32>
    %85 = arith.select %83, %3, %84 : vector<16x16xi1>, vector<16x16xi32>
    %cst_28 = arith.constant dense<2147483647> : vector<16xi32>
    %86 = vector.multi_reduction <minsi>, %85, %cst_28 [1] : vector<16x16xi32> to vector<16xi32>
    %87 = vector.shape_cast %86 : vector<16xi32> to vector<16x1xi32>
    %c16_i32_29 = arith.constant 16 : i32
    %88 = vector.broadcast %c16_i32_29 : i32 to vector<16x1xi32>
    %89 = arith.muli %79, %88 : vector<16x1xi32>
    %90 = arith.addi %89, %87 : vector<16x1xi32>
    %91 = arith.addf %73, %81 : vector<16x1xf32>
    %92 = tpu.concatenate %24, %46, %68, %90 in 0 : vector<16x1xi32>, vector<16x1xi32>, vector<16x1xi32>, vector<16x1xi32> -> vector<64x1xi32>
    %93 = tpu.concatenate %25, %47, %69, %91 in 0 : vector<16x1xf32>, vector<16x1xf32>, vector<16x1xf32>, vector<16x1xf32> -> vector<64x1xf32>
    %94 = tpu.iota {dimensions = array<i32: 1>} : vector<64x256xi32>
    %95 = vector.broadcast %92 : vector<64x1xi32> to vector<64x256xi32>
    %96 = arith.cmpi eq, %94, %95 : vector<64x256xi32>
    %97 = arith.extui %96 : vector<64x256xi1> to vector<64x256xi32>
    %98 = arith.sitofp %97 : vector<64x256xi32> to vector<64x256xf32>
    %c0_30 = arith.constant 0 : index
    %c0_31 = arith.constant 0 : index
    %99 = vector.load %arg3[%c0_30, %c0_31] : memref<256x32xf32, #tpu.memory_space<vmem>>, vector<256x32xf32>
    %cst_32 = arith.constant dense<0.000000e+00> : vector<64x32xf32>
    %100 = tpu.matmul %98, %99, %cst_32 {dimension_numbers = #tpu.dot_dimension_numbers<[1], [0], [0], [1], [0, 0, 1, 1], [], []>} : vector<64x256xf32>, vector<256x32xf32>, vector<64x32xf32> -> vector<64x32xf32>
    %101 = tpu.concatenate %0, %0, %0, %0 in 0 : vector<16x32xf32>, vector<16x32xf32>, vector<16x32xf32>, vector<16x32xf32> -> vector<64x32xf32>
    %102 = arith.mulf %101, %100 : vector<64x32xf32>
    %cst_33 = arith.constant dense<0.000000e+00> : vector<64xf32>
    %103 = vector.multi_reduction <add>, %102, %cst_33 [1] : vector<64x32xf32> to vector<64xf32>
    %104 = vector.shape_cast %103 : vector<64xf32> to vector<64x1xf32>
    %cst_34 = arith.constant 5.000000e-01 : f32
    %105 = vector.broadcast %cst_34 : f32 to vector<64x1xf32>
    %106 = arith.mulf %105, %104 : vector<64x1xf32>
    %cst_35 = arith.constant 0.707106769 : f32
    %107 = vector.broadcast %cst_35 : f32 to vector<64x1xf32>
    %108 = arith.mulf %104, %107 : vector<64x1xf32>
    %109 = math.erf %108 : vector<64x1xf32>
    %cst_36 = arith.constant 1.000000e+00 : f32
    %110 = vector.broadcast %cst_36 : f32 to vector<64x1xf32>
    %111 = arith.addf %110, %109 : vector<64x1xf32>
    %112 = arith.mulf %106, %111 : vector<64x1xf32>
    %cst_37 = arith.constant 0.000000e+00 : f32
    %113 = vector.broadcast %cst_37 : f32 to vector<64x1xf32>
    %114 = arith.maximumf %93, %113 : vector<64x1xf32>
    %115 = arith.mulf %112, %114 : vector<64x1xf32>
    %116 = vector.broadcast %115 : vector<64x1xf32> to vector<64x256xf32>
    %117 = arith.mulf %116, %98 : vector<64x256xf32>
    %cst_38 = arith.constant 0.000000e+00 : f32
    %118 = vector.broadcast %cst_38 : f32 to vector<16x256xf32>
    %119 = vector.extract_strided_slice %117 {offsets = [0, 0], sizes = [16, 256], strides = [1, 1]} : vector<64x256xf32> to vector<16x256xf32>
    %120 = arith.addf %118, %119 : vector<16x256xf32>
    %121 = vector.extract_strided_slice %117 {offsets = [16, 0], sizes = [16, 256], strides = [1, 1]} : vector<64x256xf32> to vector<16x256xf32>
    %122 = arith.addf %120, %121 : vector<16x256xf32>
    %123 = vector.extract_strided_slice %117 {offsets = [32, 0], sizes = [16, 256], strides = [1, 1]} : vector<64x256xf32> to vector<16x256xf32>
    %124 = arith.addf %122, %123 : vector<16x256xf32>
    %125 = vector.extract_strided_slice %117 {offsets = [48, 0], sizes = [16, 256], strides = [1, 1]} : vector<64x256xf32> to vector<16x256xf32>
    %126 = arith.addf %124, %125 : vector<16x256xf32>
    %c0_39 = arith.constant 0 : index
    %c0_40 = arith.constant 0 : index
    %127 = vector.load %arg4[%c0_39, %c0_40] : memref<256x32xf32, #tpu.memory_space<vmem>>, vector<256x32xf32>
    %cst_41 = arith.constant dense<0.000000e+00> : vector<16x32xf32>
    %128 = tpu.matmul %126, %127, %cst_41 {dimension_numbers = #tpu.dot_dimension_numbers<[1], [0], [0], [1], [0, 0, 1, 1], [], []>} : vector<16x256xf32>, vector<256x32xf32>, vector<16x32xf32> -> vector<16x32xf32>
    %c0_42 = arith.constant 0 : index
    %c0_43 = arith.constant 0 : index
    %129 = vector.load %arg5[%c0_42, %c0_43] : memref<16x32xf32, #tpu.memory_space<vmem>>, vector<16x32xf32>
    tpu.vector_store %arg5[%c0_42, %c0_43], %128 {strides = array<i32>} : memref<16x32xf32, #tpu.memory_space<vmem>>, vector<16x32xf32>,
    return
  }
  func.func @transform_0(%arg0: i32) -> (i32, i32) {
    %c0_i32 = arith.constant 0 : i32
    %c0_i32_0 = arith.constant 0 : i32
    return %arg0, %c0_i32 : i32, i32
  }
  func.func @transform_1(%arg0: i32) -> (i32, i32) {
    %c0_i32 = arith.constant 0 : i32
    %c0_i32_0 = arith.constant 0 : i32
    %c0_i32_1 = arith.constant 0 : i32
    return %c0_i32, %c0_i32_0 : i32, i32
  }
  func.func @transform_2(%arg0: i32) -> (i32, i32) {
    %c0_i32 = arith.constant 0 : i32
    %c0_i32_0 = arith.constant 0 : i32
    %c0_i32_1 = arith.constant 0 : i32
    return %c0_i32, %c0_i32_0 : i32, i32
  }
  func.func @transform_3(%arg0: i32) -> (i32, i32) {
    %c0_i32 = arith.constant 0 : i32
    %c0_i32_0 = arith.constant 0 : i32
    %c0_i32_1 = arith.constant 0 : i32
    return %c0_i32, %c0_i32_0 : i32, i32
  }
  func.func @transform_4(%arg0: i32) -> (i32, i32) {
    %c0_i32 = arith.constant 0 : i32
    %c0_i32_0 = arith.constant 0 : i32
    return %arg0, %c0_i32 : i32, i32
  }
}

</mosaic_0001>

<bundles_post_ra>
// kernel: tpu_custom_call.1
= control target key start
LH: loop header
LB: loop body
LE: loop exit
PB: predicated region body
PF: predicated region fallthrough
CT: control target
= control target key end

     0   :  { %v54_v2 = vlaneseq  ;;  %s2253_s0 = inlined_call_operand.vmem [shape: f32[16,32], index: 0, kind: input, shape index: {}]   ;;  %s2254_s1 = inlined_call_operand.vmem [shape: f32[32,128], index: 1, kind: input, shape index: {}]   ;;  %s2255_s2 = inlined_call_operand.vmem [shape: f32[256,32], index: 2, kind: input, shape index: {}]   ;;  %s2256_s3 = inlined_call_operand.vmem [shape: f32[256,32], index: 3, kind: input, shape index: {}]   ;;  %s2257_s4 = inlined_call_operand.hbm [shape: f32[16,32], index: 4, kind: output, shape index: {}]  }
   0x1   :  { %v23_v0 = vld [vmem:[%s2254_s1 + $0x18] sm:$0xff]  ;;  %v22_v1 = vld [vmem:[%s2254_s1 + $0x10] sm:$0xff]  ;;  %v21_v3 = vld [vmem:[%s2254_s1 + $0x8] sm:$0xff] }
   0x2   :  { %43 = vmatpush.msra.mxu0 %v23_v0  ;;  %v1328_v4 = vand.u32 127, %v54_v2 }
   0x3   :  { %9 = vsyncpa [#allocation3], 0  ;;  %v20_v5 = vld [vmem:[%s2254_s1] sm:$0xff]  ;;  %s1281_s23 = smov 64   ;;  %s1282_s24 = smov 16   ;;  %vm2259_vm0 = vcmask 261120  }
   0x4   :  { %44 = vmatpush.msra.mxu0 %v22_v1  ;;  %106 = vrot.lane.b32.xlu1 %v1328_v4, %s1281_s23  ;;  %v1338_v6 = vld [vmem:[%s2253_s0] sm:$0xff]  ;;  %s1283_s27 = smov 80   ;;  %s1284_s1 = smov 32   ;;  %v1348_v7 = vld [vmem:[%s2253_s0 + $0x8] sm:$0xff]  ;;  %vm238_vm1 = vcmask 392448   ;;  %vm146_vm2 = vcmask 261248  }
   0x5   :  { %155 = vrot.lane.b32.xlu0 %v1328_v4, %s1282_s24  ;;  %198 = vrot.lane.b32.xlu2 %v1328_v4, %s1283_s27  ;;  %s1285_s28 = smov 48   ;;  %s1286_s5 = smov 112   ;;  %vm56_vm3 = vcmask 130048   ;;  %vm189_vm4 = vcmask 786048   ;;  %vm97_vm5 = vcmask 654848   ;;  %vm373_vm6 = vcmask 1048448  }
   0x6   :  { %45 = vmatpush.msra.mxu0 %v21_v3  ;;  %s1287_s6 = smov 96   ;;  %vm330_vm7 = vcmask 523648   ;;  %vm281_vm8 = vcmask 917248   ;;  %s1293_s29 = smov 8  }
   0x8   :  { %46 = vmatpush.msra.mxu0 %v20_v5 }
   0x9   :  { %1179 = vmatmul.msk.f32.vlgmr.msra.gmra.mxu0 %vm2259_vm0, %v1338_v6 }
   0xc   :  { %247 = vrot.lane.b32.xlu1 %v1328_v4, %s1284_s1  ;;  %s1167_s1 = sshll.u32 %s2257_s4, 4  ;;  %s1168_s1 = int_to_ptr.hbm [resolvable:$true] %s1167_s1 }
   0xd   :  { %339 = vrot.lane.b32.xlu0 %v1328_v4, %s1285_s28  ;;  %382 = vrot.lane.b32.xlu2 %v1328_v4, %s1286_s5  ;;  %s1292_s28 = smov 128  }
  0x11   :  { %1180 = vmatmul.msk.f32.gmra.mxu0 %vm2259_vm0, %v1348_v7 }
  0x14   :  { %290 = vrot.lane.b32.xlu1 %v1328_v4, %s1287_s6 }
  0x5f   :  { %v1392_v27 = vpop.permute.xlu2 %198 }
  0x67   :  { %v1398_v30 = vpop.permute.xlu2 %382 }
  0x76   :  { %v1390_v26 = vpop.permute.xlu1 %106 }
  0x77   :  { %v1396_v29 = vpop.permute.xlu0 %155 }
  0x7e   :  { %v1394_v28 = vpop.permute.xlu1 %247 }
  0x7f   :  { %v1402_v32 = vpop.permute.xlu0 %339 }
  0x86   :  { %v1354_v8 = vpop.f32.mrf.mxu0  ;;  %v1400_v31 = vpop.permute.xlu1 %290 }
  0x87   :  { %v239_v9 = vsel %vm238_vm1, %v1354_v8, -inf  ;;  %v147_v10 = vsel %vm146_vm2, %v1354_v8, -inf  ;;  %v57_v11 = vsel %vm56_vm3, %v1354_v8, -inf  ;;  %v190_v13 = vsel %vm189_vm4, %v1354_v8, -inf }
  0x88   :  { %240 = vmax.xlane.f32.xlu1 %v239_v9  ;;  %148 = vmax.xlane.f32.xlu2 %v147_v10  ;;  %v98_v15 = vsel %vm97_vm5, %v1354_v8, -inf  ;;  %v374_v17 = vsel %vm373_vm6, %v1354_v8, -inf  ;;  %v282_v18 = vsel %vm281_vm8, %v1354_v8, -inf  ;;  %v331_v21 = vsel %vm330_vm7, %v1354_v8, -inf }
  0x89   :  { %58 = vmax.xlane.f32.xlu0 %v57_v11 }
  0x8e   :  { %v1362_v12 = vpop.f32.mrf.mxu0 }
  0x8f   :  { %v60_v14 = vsel %vm56_vm3, %v1362_v12, -inf  ;;  %v334_v16 = vsel %vm330_vm7, %v1362_v12, -inf  ;;  %v101_v19 = vsel %vm97_vm5, %v1362_v12, -inf  ;;  %v377_v20 = vsel %vm373_vm6, %v1362_v12, -inf }
  0x90   :  { %191 = vmax.xlane.f32.xlu2 %v190_v13  ;;  %61 = vmax.xlane.f32.xlu1 %v60_v14  ;;  %v193_v22 = vsel %vm189_vm4, %v1362_v12, -inf  ;;  %v150_v23 = vsel %vm146_vm2, %v1362_v12, -inf  ;;  %v285_v24 = vsel %vm281_vm8, %v1362_v12, -inf  ;;  %v242_v25 = vsel %vm238_vm1, %v1362_v12, -inf }
  0x91   :  { %99 = vmax.xlane.f32.xlu0 %v98_v15 }
  0x98   :  { %375 = vmax.xlane.f32.xlu2 %v374_v17  ;;  %335 = vmax.xlane.f32.xlu1 %v334_v16 }
  0x99   :  { %283 = vmax.xlane.f32.xlu0 %v282_v18 }
  0xa0   :  { %102 = vmax.xlane.f32.xlu2 %v101_v19  ;;  %378 = vmax.xlane.f32.xlu1 %v377_v20 }
  0xa1   :  { %332 = vmax.xlane.f32.xlu0 %v331_v21 }
  0xa8   :  { %194 = vmax.xlane.f32.xlu2 %v193_v22 }
  0xa9   :  { %151 = vmax.xlane.f32.xlu0 %v150_v23 }
  0xb0   :  { %286 = vmax.xlane.f32.xlu2 %v285_v24 }
  0xb1   :  { %243 = vmax.xlane.f32.xlu0 %v242_v25 }
  0xfb   :  { %v241_v33 = vpop.xlane.xlu1 %240  ;;  %v149_v34 = vpop.xlane.xlu2 %148 }
  0xfc   :  { %vm245_vm9 = vcmp.eq.f32.partialorder %v1354_v8, %v241_v33  ;;  %v59_v35 = vpop.xlane.xlu0 %58  ;;  %vm153_vm10 = vcmp.eq.f32.partialorder %v1354_v8, %v149_v34 }
  0xfd   :  { %v249_v36 = vsel %vm245_vm9, %v1394_v28, 16  ;;  %vm63_vm11 = vcmp.eq.f32.partialorder %v1354_v8, %v59_v35  ;;  %v157_v41 = vsel %vm153_vm10, %v1396_v29, 16 }
  0xfe   :  { %v65_v37 = vsel %vm63_vm11, %v1328_v4, 16  ;;  %v1410_v38 = vsel %vm238_vm1, %v249_v36, 2147483647  ;;  %v1424_v46 = vsel %vm146_vm2, %v157_v41, 2147483647 }
  0xff   :  { %v253_v39 = vshra.s32 %v1410_v38, 16  ;;  %v1414_v40 = vsel %vm56_vm3, %v65_v37, 2147483647  ;;  %v161_v51 = vshra.s32 %v1424_v46, 16 }
 0x100   :  { %v69_v42 = vshra.s32 %v1414_v40, 16 }
 0x101   :  { %v1418_v43 = vcvt.s32.f32 %v253_v39  ;;  %v1442_v56 = vcvt.s32.f32 %v161_v51 }
 0x102   :  { %v1420_v44 = vcvt.s32.f32 %v69_v42 }
 0x103   :  { %v192_v45 = vpop.xlane.xlu2 %191  ;;  %256 = vmin.xlane.f32.xlu0 %v1418_v43  ;;  %v62_v62 = vpop.xlane.xlu1 %61 }
 0x104   :  { %v1426_v47 = vadd.f32 %v192_v45, %v149_v34  ;;  %v100_v48 = vpop.xlane.xlu0 %99  ;;  %72 = vmin.xlane.f32.xlu1 %v1420_v44  ;;  %vm196_vm12 = vcmp.eq.f32.partialorder %v1354_v8, %v192_v45  ;;  %vm64_vm10 = vcmp.eq.f32.partialorder %v1362_v12, %v62_v62 }
 0x105   :  { %vm104_vm13 = vcmp.eq.f32.partialorder %v1354_v8, %v100_v48  ;;  %v1431_v49 = vadd.f32 %v100_v48, %v59_v35  ;;  %v200_v53 = vsel %vm196_vm12, %v1392_v27, 16  ;;  %v66_v21 = vsel %vm64_vm10, %v1328_v4, 16 }
 0x106   :  { %v108_v50 = vsel %vm104_vm13, %v1390_v26, 16  ;;  %v1445_v58 = vsel %vm189_vm4, %v200_v53, 2147483647 }
 0x107   :  { %v1436_v52 = vsel %vm97_vm5, %v108_v50, 2147483647  ;;  %v204_v0 = vshra.s32 %v1445_v58, 16 }
 0x108   :  { %v112_v54 = vshra.s32 %v1436_v52, 16 }
 0x109   :  { %v1462_v5 = vcvt.s32.f32 %v204_v0 }
 0x10a   :  { %v1440_v55 = vcvt.s32.f32 %v112_v54 }
 0x10b   :  { %v376_v57 = vpop.xlane.xlu2 %375  ;;  %v1487_v22 = vpop.xlane.xlu1 %335 }
 0x10c   :  { %vm380_vm14 = vcmp.eq.f32.partialorder %v1354_v8, %v376_v57  ;;  %v284_v59 = vpop.xlane.xlu0 %283  ;;  %115 = vmin.xlane.f32.xlu2 %v1440_v55  ;;  %164 = vmin.xlane.f32.xlu1 %v1442_v56 }
 0x10d   :  { %v384_v60 = vsel %vm380_vm14, %v1398_v30, 16  ;;  %v1451_v61 = vadd.f32 %v284_v59, %v241_v33  ;;  %vm288_vm15 = vcmp.eq.f32.partialorder %v1354_v8, %v284_v59  ;;  %v1497_v33 = vsel %vm56_vm3, %v66_v21, 2147483647 }
 0x10e   :  { %v1455_v63 = vsel %vm373_vm6, %v384_v60, 2147483647  ;;  %v292_v2 = vsel %vm288_vm15, %v1400_v31, 16  ;;  %v84_v39 = vshra.s32 %v1497_v33, 16 }
 0x10f   :  { %v388_v1 = vshra.s32 %v1455_v63, 16  ;;  %v1470_v13 = vsel %vm281_vm8, %v292_v2, 2147483647 }
 0x110   :  { %v296_v20 = vshra.s32 %v1470_v13, 16  ;;  %v1517_v50 = vcvt.s32.f32 %v84_v39 }
 0x111   :  { %v1460_v3 = vcvt.s32.f32 %v388_v1 }
 0x113   :  { %v103_v9 = vpop.xlane.xlu2 %102  ;;  %v1515_v48 = vpop.xlane.xlu1 %378 }
 0x114   :  { %v333_v10 = vpop.xlane.xlu0 %332  ;;  %391 = vmin.xlane.f32.xlu2 %v1460_v3  ;;  %vm105_vm9 = vcmp.eq.f32.partialorder %v1362_v12, %v103_v9  ;;  %v1466_v11 = vadd.f32 %v103_v9, %v62_v62  ;;  %207 = vmin.xlane.f32.xlu1 %v1462_v5 }
 0x115   :  { %vm337_vm11 = vcmp.eq.f32.partialorder %v1354_v8, %v333_v10  ;;  %v1474_v14 = vadd.f32 %v376_v57, %v333_v10  ;;  %v109_v15 = vsel %vm105_vm9, %v1390_v26, 16  ;;  %v1494_v26 = vcvt.s32.f32 %v296_v20 }
 0x116   :  { %v341_v16 = vsel %vm337_vm11, %v1402_v32, 16  ;;  %v1479_v17 = vsel %vm97_vm5, %v109_v15, 2147483647 }
 0x117   :  { %v1482_v18 = vsel %vm330_vm7, %v341_v16, 2147483647  ;;  %v127_v19 = vshra.s32 %v1479_v17, 16 }
 0x118   :  { %v345_v8 = vshra.s32 %v1482_v18, 16 }
 0x119   :  { %v1490_v23 = vcvt.s32.f32 %v127_v19  ;;  %v68_v19 = vand.u32 65535, %v1414_v40  ;;  %v160_v40 = vand.u32 65535, %v1424_v46  ;;  %v126_v46 = vand.u32 65535, %v1479_v17 }
 0x11a   :  { %v1492_v24 = vcvt.s32.f32 %v345_v8 }
 0x11b   :  { %v195_v25 = vpop.xlane.xlu2 %194  ;;  %v70_v21 = vcvt.s32.f32 %v68_v19 }
 0x11c   :  { %348 = vmin.xlane.f32.xlu0 %v1492_v24  ;;  %v152_v34 = vpop.xlane.xlu0 %151  ;;  %130 = vmin.xlane.f32.xlu2 %v1490_v23  ;;  %vm197_vm5 = vcmp.eq.f32.partialorder %v1362_v12, %v195_v25 }
 0x11d   :  { %vm154_vm12 = vcmp.eq.f32.partialorder %v1362_v12, %v152_v34  ;;  %v201_v35 = vsel %vm197_vm5, %v1392_v27, 16  ;;  %v1504_v36 = vadd.f32 %v195_v25, %v152_v34  ;;  %299 = vmin.xlane.f32.xlu1 %v1494_v26  ;;  %v111_v25 = vand.u32 65535, %v1436_v52 }
 0x11e   :  { %v1508_v37 = vsel %vm189_vm4, %v201_v35, 2147483647  ;;  %v158_v42 = vsel %vm154_vm12, %v1396_v29, 16  ;;  %vm381_vm4 = vcmp.eq.f32.partialorder %v1362_v12, %v1515_v48 }
 0x11f   :  { %v219_v41 = vshra.s32 %v1508_v37, 16  ;;  %v1522_v51 = vsel %vm146_vm2, %v158_v42, 2147483647  ;;  %vm338_vm2 = vcmp.eq.f32.partialorder %v1362_v12, %v1487_v22  ;;  %v385_v0 = vsel %vm381_vm4, %v1398_v30, 16 }
 0x120   :  { %v176_v59 = vshra.s32 %v1522_v51, 16  ;;  %v342_v1 = vsel %vm338_vm2, %v1402_v32, 16  ;;  %v1556_v9 = vsel %vm373_vm6, %v385_v0, 2147483647  ;;  %v113_v39 = vcvt.s32.f32 %v111_v25 }
 0x121   :  { %v1513_v45 = vcvt.s32.f32 %v219_v41  ;;  %v1561_v10 = vsel %vm330_vm7, %v342_v1, 2147483647  ;;  %v403_v30 = vshra.s32 %v1556_v9, 16  ;;  %v203_v42 = vand.u32 65535, %v1445_v58 }
 0x122   :  { %v360_v32 = vshra.s32 %v1561_v10, 16  ;;  %v252_v58 = vand.u32 65535, %v1410_v38  ;;  %v295_v0 = vand.u32 65535, %v1470_v13  ;;  %v128_v1 = vcvt.s32.f32 %v126_v46 }
 0x123   :  { %v1519_v27 = vpop.xlane.xlu2 %286  ;;  %v1566_v15 = vcvt.s32.f32 %v403_v30  ;;  %v344_v13 = vand.u32 65535, %v1482_v18  ;;  %v387_v46 = vand.u32 65535, %v1455_v63 }
 0x124   :  { %v1524_v53 = vpop.xlane.xlu0 %243  ;;  %vm289_vm3 = vcmp.eq.f32.partialorder %v1362_v12, %v1519_v27  ;;  %87 = vmin.xlane.f32.xlu0 %v1517_v50  ;;  %v1568_v16 = vcvt.s32.f32 %v360_v32  ;;  %v254_v30 = vcvt.s32.f32 %v252_v58  ;;  %v297_v32 = vcvt.s32.f32 %v295_v0 }
 0x125   :  { %vm246_vm13 = vcmp.eq.f32.partialorder %v1362_v12, %v1524_v53  ;;  %v293_v29 = vsel %vm289_vm3, %v1400_v31, 16  ;;  %222 = vmin.xlane.f32.xlu1 %v1513_v45 }
 0x126   :  { %v250_v54 = vsel %vm246_vm13, %v1394_v28, 16  ;;  %v1539_v57 = vsel %vm281_vm8, %v293_v29, 2147483647  ;;  %v1553_v28 = vcvt.s32.f32 %v176_v59  ;;  %v205_v59 = vcvt.s32.f32 %v203_v42 }
 0x127   :  { %v1543_v60 = vsel %vm238_vm1, %v250_v54, 2147483647  ;;  %v311_v62 = vshra.s32 %v1539_v57, 16  ;;  %v162_v54 = vcvt.s32.f32 %v160_v40  ;;  %v310_v40 = vand.u32 65535, %v1539_v57 }
 0x128   :  { %v268_v31 = vshra.s32 %v1543_v60, 16 }
 0x129   :  { %v1549_v2 = vcvt.s32.f32 %v311_v62 }
 0x12a   :  { %v1551_v12 = vcvt.s32.f32 %v268_v31 }
 0x12c   :  { %271 = vmin.xlane.f32.xlu2 %v1551_v12  ;;  %179 = vmin.xlane.f32.xlu0 %v1553_v28 }
 0x12d   :  { %314 = vmin.xlane.f32.xlu1 %v1549_v2 }
 0x134   :  { %406 = vmin.xlane.f32.xlu0 %v1566_v15 }
 0x135   :  { %363 = vmin.xlane.f32.xlu1 %v1568_v16 }
 0x176   :  { %v1586_v29 = vpop.xlane.xlu0 %256 }
 0x177   :  { %v1573_v20 = vpop.xlane.xlu1 %72  ;;  %vm258_vm14 = vcmp.eq.f32.partialorder %v1418_v43, %v1586_v29  ;;  %v83_v43 = vand.u32 65535, %v1497_v33 }
 0x178   :  { %vm74_vm1 = vcmp.eq.f32.partialorder %v1420_v44, %v1573_v20  ;;  %v259_v19 = vsel %vm258_vm14, %v254_v30, inf }
 0x179   :  { %v75_v8 = vsel %vm74_vm1, %v70_v21, inf  ;;  %v218_v21 = vand.u32 65535, %v1508_v37  ;;  %v85_v25 = vcvt.s32.f32 %v83_v43  ;;  %v175_v37 = vand.u32 65535, %v1522_v51 }
 0x17a   :  { %76 = vmin.xlane.f32.xlu0 %v75_v8 }
 0x17f   :  { %v1578_v34 = vpop.xlane.xlu2 %115  ;;  %v1580_v35 = vpop.xlane.xlu1 %164 }
 0x180   :  { %vm117_vm6 = vcmp.eq.f32.partialorder %v1440_v55, %v1578_v34  ;;  %vm166_vm7 = vcmp.eq.f32.partialorder %v1442_v56, %v1580_v35 }
 0x181   :  { %v118_v41 = vsel %vm117_vm6, %v113_v39, inf  ;;  %v167_v55 = vsel %vm166_vm7, %v162_v54, inf  ;;  %v220_v39 = vcvt.s32.f32 %v218_v21  ;;  %v177_v54 = vcvt.s32.f32 %v175_v37 }
 0x182   :  { %119 = vmin.xlane.f32.xlu2 %v118_v41 }
 0x187   :  { %v1590_v44 = vpop.xlane.xlu2 %391  ;;  %v1592_v52 = vpop.xlane.xlu1 %207 }
 0x188   :  { %vm209_vm8 = vcmp.eq.f32.partialorder %v1462_v5, %v1592_v52  ;;  %vm393_vm13 = vcmp.eq.f32.partialorder %v1460_v3, %v1590_v44  ;;  %v1288_v3 = vmov 0  }
 0x189   :  { %v210_v62 = vsel %vm209_vm8, %v205_v59, inf  ;;  %1234 = vset.pattern.permute.xlu0 %v1288_v3  ;;  %1236 = vset.pattern.permute.xlu2 %v1288_v3 }
 0x18a   :  { %168 = vmin.xlane.f32.xlu2 %v167_v55  ;;  %211 = vmin.xlane.f32.xlu1 %v210_v62 }
 0x18b   :  { %1235 = vset.pattern.permute.xlu1 %v1288_v3 }
 0x18f   :  { %v1601_v56 = vpop.xlane.xlu0 %348  ;;  %v1603_v31 = vpop.xlane.xlu2 %130 }
 0x190   :  { %v1605_v5 = vpop.xlane.xlu1 %299  ;;  %vm132_vm15 = vcmp.eq.f32.partialorder %v1490_v23, %v1603_v31  ;;  %vm350_vm10 = vcmp.eq.f32.partialorder %v1492_v24, %v1601_v56  ;;  %v267_v24 = vand.u32 65535, %v1543_v60  ;;  %v359_v60 = vand.u32 65535, %v1561_v10 }
 0x191   :  { %v133_v17 = vsel %vm132_vm15, %v128_v1, inf  ;;  %vm301_vm9 = vcmp.eq.f32.partialorder %v1494_v26, %v1605_v5  ;;  %v346_v26 = vcvt.s32.f32 %v344_v13  ;;  %v402_v10 = vand.u32 65535, %v1556_v9 }
 0x192   :  { %134 = vmin.xlane.f32.xlu0 %v133_v17  ;;  %260 = vmin.xlane.f32.xlu1 %v259_v19  ;;  %v302_v38 = vsel %vm301_vm9, %v297_v32, inf  ;;  %v269_v59 = vcvt.s32.f32 %v267_v24 }
 0x193   :  { %303 = vmin.xlane.f32.xlu2 %v302_v38  ;;  %v351_v18 = vsel %vm350_vm10, %v346_v26, inf  ;;  %v404_v63 = vcvt.s32.f32 %v402_v10  ;;  %v122_v38 = vcvt.f32.s32 %v1578_v34  ;;  %v171_v26 = vcvt.f32.s32 %v1580_v35 }
 0x194   :  { %v263_v34 = vcvt.f32.s32 %v1586_v29  ;;  %v137_v29 = vcvt.f32.s32 %v1603_v31  ;;  %v525_v31 = vld [vmem:[%s2255_s2 + $0xf0] sm:$0xff] }
 0x195   :  { %v123_v9 = vshll.u32 %v122_v38, 16  ;;  %v172_v37 = vshll.u32 %v171_v26, 16 }
 0x197   :  { %v1614_v8 = vpop.xlane.xlu0 %87 }
 0x198   :  { %v1618_v23 = vpop.xlane.xlu1 %222  ;;  %vm89_vm11 = vcmp.eq.f32.partialorder %v1517_v50, %v1614_v8 }
 0x199   :  { %v90_v41 = vsel %vm89_vm11, %v85_v25, inf  ;;  %vm224_vm5 = vcmp.eq.f32.partialorder %v1513_v45, %v1618_v23  ;;  %v312_v45 = vcvt.s32.f32 %v310_v40 }
 0x19a   :  { %91 = vmin.xlane.f32.xlu1 %v90_v41  ;;  %v225_v33 = vsel %vm224_vm5, %v220_v39, inf  ;;  %v214_v41 = vcvt.f32.s32 %v1592_v52 }
 0x19b   :  { %352 = vmin.xlane.f32.xlu2 %v351_v18  ;;  %226 = vmin.xlane.f32.xlu0 %v225_v33 }
 0x19c   :  { %v215_v40 = vshll.u32 %v214_v41, 16  ;;  %v523_v41 = vld [vmem:[%s2255_s2 + $0xe0] sm:$0xff] }
 0x19f   :  { %v1627_v42 = vpop.xlane.xlu2 %271  ;;  %v1629_v50 = vpop.xlane.xlu0 %179 }
 0x1a0   :  { %v1631_v55 = vpop.xlane.xlu1 %314  ;;  %vm181_vm12 = vcmp.eq.f32.partialorder %v1553_v28, %v1629_v50  ;;  %vm273_vm3 = vcmp.eq.f32.partialorder %v1551_v12, %v1627_v42  ;;  %v361_v12 = vcvt.s32.f32 %v359_v60  ;;  %v389_v28 = vcvt.s32.f32 %v387_v46 }
 0x1a1   :  { %v182_v51 = vsel %vm181_vm12, %v177_v54, inf  ;;  %v274_v62 = vsel %vm273_vm3, %v269_v59, inf  ;;  %vm316_vm4 = vcmp.eq.f32.partialorder %v1549_v2, %v1631_v55  ;;  %v264_v60 = vshll.u32 %v263_v34, 16  ;;  %v521_v34 = vld [vmem:[%s2255_s2 + $0xd0] sm:$0xff] }
 0x1a2   :  { %v317_v57 = vsel %vm316_vm4, %v312_v45, inf  ;;  %v394_v2 = vsel %vm393_vm13, %v389_v28, inf }
 0x1a3   :  { %183 = vmin.xlane.f32.xlu2 %v182_v51  ;;  %275 = vmin.xlane.f32.xlu0 %v274_v62  ;;  %v306_v51 = vcvt.f32.s32 %v1605_v5  ;;  %v510_v5 = vld [vmem:[%s2255_s2 + $0x78] sm:$0xff] }
 0x1a4   :  { %318 = vmin.xlane.f32.xlu1 %v317_v57  ;;  %527 = vmatpush.msra.mxu1 %v510_v5 }
 0x1a5   :  { %v307_v28 = vshll.u32 %v306_v51, 16 }
 0x1a7   :  { %v1647_v1 = vpop.xlane.xlu0 %406 }
 0x1a8   :  { %v1641_v58 = vpop.xlane.xlu1 %363  ;;  %vm408_vm1 = vcmp.eq.f32.partialorder %v1566_v15, %v1647_v1 }
 0x1a9   :  { %vm365_vm2 = vcmp.eq.f32.partialorder %v1568_v16, %v1641_v58  ;;  %v409_v30 = vsel %vm408_vm1, %v404_v63, inf  ;;  %v79_v16 = vcvt.f32.s32 %v1573_v20 }
 0x1aa   :  { %v366_v0 = vsel %vm365_vm2, %v361_v12, inf }
 0x1ab   :  { %367 = vmin.xlane.f32.xlu2 %v366_v0  ;;  %v80_v19 = vshll.u32 %v79_v16, 16  ;;  %v509_v16 = vld [vmem:[%s2255_s2 + $0x70] sm:$0xff] }
 0x1ac   :  { %395 = vmin.xlane.f32.xlu1 %v394_v2  ;;  %v94_v2 = vcvt.f32.s32 %v1614_v8  ;;  %528 = vmatpush.msra.mxu1 %v509_v16 }
 0x1b3   :  { %410 = vmin.xlane.f32.xlu2 %v409_v30 }
 0x1ed   :  { %v77_v32 = vpop.xlane.xlu0 %76 }
 0x1ee   :  { %v78_v17 = vcvt.f32.s32 %v77_v32  ;;  %v526_v32 = vld [vmem:[%s2255_s2 + $0xf8] sm:$0xff] }
 0x1ef   :  { %568 = vmatpush.msra.mxu2 %v526_v32 }
 0x1f0   :  { %v81_v43 = vadd.s32 %v80_v19, %v78_v17  ;;  %v95_v17 = vshll.u32 %v94_v2, 16 }
 0x1f1   :  { %569 = vmatpush.msra.mxu2 %v525_v31 }
 0x1f2   :  { %v140_v25 = vmul.u32 16, %v81_v43 }
 0x1f5   :  { %v120_v13 = vpop.xlane.xlu2 %119 }
 0x1f6   :  { %v121_v21 = vcvt.f32.s32 %v120_v13  ;;  %v508_v13 = vld [vmem:[%s2255_s2 + $0x68] sm:$0xff] }
 0x1f7   :  { %529 = vmatpush.msra.mxu1 %v508_v13 }
 0x1f8   :  { %v124_v15 = vadd.s32 %v123_v9, %v121_v21  ;;  %v138_v9 = vshll.u32 %v137_v29, 16 }
 0x1fa   :  { %v142_v39 = vadd.s32 %v140_v25, %v124_v15  ;;  %v524_v25 = vld [vmem:[%s2255_s2 + $0xe8] sm:$0xff]  ;;  %v507_v15 = vld [vmem:[%s2255_s2 + $0x60] sm:$0xff] }
 0x1fb   :  { %570 = vmatpush.msra.mxu2 %v524_v25  ;;  %530 = vmatpush.msra.mxu1 %v507_v15  ;;  %v413_v25 = vcvt.f32.s32 %v1647_v1  ;;  %v518_v1 = vld [vmem:[%s2255_s2 + $0xb8] sm:$0xff] }
 0x1fc   :  { %424 = vperm.xlu0 %1234, %v142_v39  }
 0x1fd   :  { %v169_v18 = vpop.xlane.xlu2 %168  ;;  %v212_v33 = vpop.xlane.xlu1 %211  ;;  %571 = vmatpush.msra.mxu2 %v523_v41 }
 0x1fe   :  { %v170_v20 = vcvt.f32.s32 %v169_v18  ;;  %v213_v24 = vcvt.f32.s32 %v212_v33  ;;  %v186_v18 = vcvt.f32.s32 %v1629_v50  ;;  %v506_v33 = vld [vmem:[%s2255_s2 + $0x58] sm:$0xff] }
 0x1ff   :  { %531 = vmatpush.msra.mxu1 %v506_v33 }
 0x200   :  { %v173_v54 = vadd.s32 %v172_v37, %v170_v20  ;;  %v216_v45 = vadd.s32 %v215_v40, %v213_v24  ;;  %v522_v20 = vld [vmem:[%s2255_s2 + $0xd8] sm:$0xff]  ;;  %v229_v24 = vcvt.f32.s32 %v1618_v23  ;;  %v505_v40 = vld [vmem:[%s2255_s2 + $0x50] sm:$0xff]  ;;  %v504_v23 = vld [vmem:[%s2255_s2 + $0x48] sm:$0xff] }
 0x201   :  { %572 = vmatpush.msra.mxu2 %v522_v20  ;;  %532 = vmatpush.msra.mxu1 %v505_v40  ;;  %v502_v40 = vld [vmem:[%s2255_s2 + $0x38] sm:$0xff] }
 0x202   :  { %v232_v59 = vmul.u32 16, %v173_v54 }
 0x203   :  { %573 = vmatpush.msra.mxu2 %v521_v34  ;;  %533 = vmatpush.msra.mxu1 %v504_v23  ;;  %v500_v34 = vld [vmem:[%s2255_s2 + $0x28] sm:$0xff]  ;;  %v497_v23 = vld [vmem:[%s2255_s2 + $0x10] sm:$0xff] }
 0x204   :  { %v234_v62 = vadd.s32 %v232_v59, %v216_v45  ;;  %v278_v59 = vcvt.f32.s32 %v1627_v42  ;;  %v187_v45 = vshll.u32 %v186_v18, 16  ;;  %v503_v42 = vld [vmem:[%s2255_s2 + $0x40] sm:$0xff] }
 0x205   :  { %v135_v57 = vpop.xlane.xlu0 %134  ;;  %v261_v35 = vpop.xlane.xlu1 %260  ;;  %534 = vmatpush.msra.mxu1 %v503_v42  ;;  %v1765_v42 = vadd.s32 128, %v1328_v4 }
 0x206   :  { %v304_v46 = vpop.xlane.xlu2 %303  ;;  %v262_v52 = vcvt.f32.s32 %v261_v35  ;;  %430 = vperm.xlu2 %1236, %v234_v62   ;;  %v136_v8 = vcvt.f32.s32 %v135_v57  ;;  %v355_v35 = vcvt.f32.s32 %v1601_v56  ;;  %v279_v56 = vshll.u32 %v278_v59, 16  ;;  %v516_v59 = vld [vmem:[%s2255_s2 + $0xa8] sm:$0xff] }
 0x207   :  { %v305_v12 = vcvt.f32.s32 %v304_v46  ;;  %v230_v46 = vshll.u32 %v229_v24, 16  ;;  %535 = vmatpush.msra.mxu1 %v502_v40 }
 0x208   :  { %v265_v0 = vadd.s32 %v264_v60, %v262_v52  ;;  %v139_v26 = vadd.s32 %v138_v9, %v136_v8  ;;  %v520_v60 = vld [vmem:[%s2255_s2 + $0xc8] sm:$0xff]  ;;  %v356_v29 = vshll.u32 %v355_v35, 16  ;;  %v513_v35 = vld [vmem:[%s2255_s2 + $0x90] sm:$0xff] }
 0x209   :  { %v308_v10 = vadd.s32 %v307_v28, %v305_v12  ;;  %574 = vmatpush.msra.mxu2 %v520_v60  ;;  %v496_v60 = vld [vmem:[%s2255_s2 + $0x8] sm:$0xff] }
 0x20a   :  { %v324_v63 = vmul.u32 16, %v265_v0  ;;  %v519_v0 = vld [vmem:[%s2255_s2 + $0xc0] sm:$0xff] }
 0x20b   :  { %575 = vmatpush.msra.mxu2 %v519_v0  ;;  %v1289_v0 = vmov 1.0  }
 0x20c   :  { %v326_v30 = vadd.s32 %v324_v63, %v308_v10  ;;  %v398_v63 = vcvt.f32.s32 %v1590_v44 }
 0x20d   :  { %v92_v3 = vpop.xlane.xlu1 %91  ;;  %576 = vmatpush.msra.mxu2 %v518_v1 }
 0x20e   :  { %v353_v19 = vpop.xlane.xlu2 %352  ;;  %v227_v38 = vpop.xlane.xlu0 %226  ;;  %v93_v43 = vcvt.f32.s32 %v92_v3  ;;  %436 = vperm.xlu0 %1234, %v326_v30   ;;  %v321_v30 = vcvt.f32.s32 %v1631_v55 }
 0x20f   :  { %v228_v51 = vcvt.f32.s32 %v227_v38  ;;  %v354_v28 = vcvt.f32.s32 %v353_v19  ;;  %v399_v38 = vshll.u32 %v398_v63, 16 }
 0x210   :  { %v96_v21 = vadd.s32 %v95_v17, %v93_v43  ;;  %v370_v17 = vcvt.f32.s32 %v1641_v58  ;;  %v322_v31 = vshll.u32 %v321_v30, 16  ;;  %v414_v58 = vshll.u32 %v413_v25, 16 }
 0x211   :  { %v231_v2 = vadd.s32 %v230_v46, %v228_v51  ;;  %v357_v32 = vadd.s32 %v356_v29, %v354_v28  ;;  %v515_v51 = vld [vmem:[%s2255_s2 + $0xa0] sm:$0xff]  ;;  %v512_v46 = vld [vmem:[%s2255_s2 + $0x88] sm:$0xff] }
 0x212   :  { %v141_v39 = vmul.u32 16, %v96_v21  ;;  %v371_v55 = vshll.u32 %v370_v17, 16 }
 0x213   :  { %v416_v44 = vmul.u32 16, %v357_v32 }
 0x214   :  { %v143_v37 = vadd.s32 %v141_v39, %v139_v26 }
 0x216   :  { %v184_v54 = vpop.xlane.xlu2 %183  ;;  %v276_v50 = vpop.xlane.xlu0 %275  ;;  %427 = vperm.xlu1 %1235, %v143_v37  }
 0x217   :  { %v185_v62 = vcvt.f32.s32 %v184_v54  ;;  %v319_v57 = vpop.xlane.xlu1 %318  ;;  %v277_v12 = vcvt.f32.s32 %v276_v50  ;;  %v501_v54 = vld [vmem:[%s2255_s2 + $0x30] sm:$0xff] }
 0x218   :  { %v320_v8 = vcvt.f32.s32 %v319_v57  ;;  %v517_v50 = vld [vmem:[%s2255_s2 + $0xb0] sm:$0xff]  ;;  %536 = vmatpush.msra.mxu1 %v501_v54  ;;  %v514_v57 = vld [vmem:[%s2255_s2 + $0x98] sm:$0xff] }
 0x219   :  { %v188_v52 = vadd.s32 %v187_v45, %v185_v62  ;;  %v280_v3 = vadd.s32 %v279_v56, %v277_v12  ;;  %577 = vmatpush.msra.mxu2 %v517_v50  ;;  %v499_v45 = vld [vmem:[%s2255_s2 + $0x20] sm:$0xff]  ;;  %v498_v62 = vld [vmem:[%s2255_s2 + $0x18] sm:$0xff] }
 0x21a   :  { %v323_v15 = vadd.s32 %v322_v31, %v320_v8  ;;  %537 = vmatpush.msra.mxu1 %v500_v34  ;;  %v511_v12 = vld [vmem:[%s2255_s2 + $0x80] sm:$0xff] }
 0x21b   :  { %v233_v10 = vmul.u32 16, %v188_v52  ;;  %v325_v13 = vmul.u32 16, %v280_v3  ;;  %578 = vmatpush.msra.mxu2 %v516_v59  ;;  %v495_v52 = vld [vmem:[%s2255_s2] sm:$0xff] }
 0x21c   :  { %538 = vmatpush.msra.mxu1 %v499_v45 }
 0x21d   :  { %v235_v5 = vadd.s32 %v233_v10, %v231_v2  ;;  %v327_v41 = vadd.s32 %v325_v13, %v323_v15  ;;  %579 = vmatpush.msra.mxu2 %v515_v51 }
 0x21e   :  { %v368_v16 = vpop.xlane.xlu2 %367  ;;  %539 = vmatpush.msra.mxu1 %v498_v62 }
 0x21f   :  { %v396_v19 = vpop.xlane.xlu1 %395  ;;  %433 = vperm.xlu1 %1235, %v235_v5   ;;  %v369_v9 = vcvt.f32.s32 %v368_v16  ;;  %580 = vmatpush.msra.mxu2 %v514_v57 }
 0x220   :  { %v397_v43 = vcvt.f32.s32 %v396_v19  ;;  %540 = vmatpush.msra.mxu1 %v497_v23 }
 0x221   :  { %v372_v39 = vadd.s32 %v371_v55, %v369_v9  ;;  %581 = vmatpush.msra.mxu2 %v513_v35  ;;  %v1254_v35 = vld [vmem:[%s2253_s0 + $0x8] sm:$0xff] }
 0x222   :  { %v400_v21 = vadd.s32 %v399_v38, %v397_v43  ;;  %541 = vmatpush.msra.mxu1 %v496_v60 }
 0x223   :  { %v417_v37 = vmul.u32 16, %v372_v39  ;;  %582 = vmatpush.msra.mxu2 %v512_v46 }
 0x224   :  { %v418_v26 = vadd.s32 %v416_v44, %v400_v21  ;;  %542 = vmatpush.msra.mxu1 %v495_v52 }
 0x225   :  { %583 = vmatpush.msra.mxu2 %v511_v12 }
 0x226   :  { %442 = vperm.xlu2 %1236, %v418_v26   ;;  %v411_v18 = vpop.xlane.xlu2 %410 }
 0x227   :  { %v412_v33 = vcvt.f32.s32 %v411_v18  ;;  %439 = vperm.xlu1 %1235, %v327_v41  }
 0x229   :  { %v415_v20 = vadd.s32 %v414_v58, %v412_v33  ;;  %v1253_v58 = vld [vmem:[%s2253_s0] sm:$0xff] }
 0x22b   :  { %v419_v24 = vadd.s32 %v417_v37, %v415_v20 }
 0x22d   :  { %445 = vperm.xlu0 %1234, %v419_v24  }
 0x260   :  { %v1791_v2 = vpop.permute.xlu2 %430 }
 0x261   :  { %vm451_vm15 = vcmp.eq.s32.totalorder %v1328_v4, %v1791_v2  ;;  %vm452_vm9 = vcmp.eq.s32.totalorder %v1765_v42, %v1791_v2 }
 0x26e   :  { %v1767_v28 = vpop.permute.xlu0 %424 }
 0x26f   :  { %vm447_vm6 = vcmp.eq.s32.totalorder %v1328_v4, %v1767_v28  ;;  %vm448_vm7 = vcmp.eq.s32.totalorder %v1765_v42, %v1767_v28 }
 0x270   :  { %1197 = vmatmul.msk.f32.vlgmr.msra.gmra.mxu1 %vm447_vm6, %v1289_v0  ;;  %1205 = vmatmul.msk.f32.vlgmr.msra.gmra.mxu2 %vm448_vm7, %v1289_v0 }
 0x280   :  { %v1815_v63 = vpop.permute.xlu0 %436  ;;  %v1839_v30 = vpop.permute.xlu2 %442 }
 0x281   :  { %vm455_vm5 = vcmp.eq.s32.totalorder %v1328_v4, %v1815_v63  ;;  %vm456_vm12 = vcmp.eq.s32.totalorder %v1765_v42, %v1815_v63  ;;  %vm459_vm13 = vcmp.eq.s32.totalorder %v1328_v4, %v1839_v30  ;;  %vm460_vm2 = vcmp.eq.s32.totalorder %v1765_v42, %v1839_v30  ;;  %v1105_v63 = vld [vmem:[%s2256_s3 + $0xc0] sm:$0xff] }
 0x288   :  { %v1779_v56 = vpop.permute.xlu1 %427 }
 0x289   :  { %vm449_vm8 = vcmp.eq.s32.totalorder %v1328_v4, %v1779_v56  ;;  %vm450_vm14 = vcmp.eq.s32.totalorder %v1765_v42, %v1779_v56 }
 0x28a   :  { %1198 = vmatmul.msk.f32.gmra.mxu1 %vm449_vm8, %v1289_v0  ;;  %1206 = vmatmul.msk.f32.gmra.mxu2 %vm450_vm14, %v1289_v0 }
 0x291   :  { %v1803_v10 = vpop.permute.xlu1 %433 }
 0x292   :  { %1199 = vmatmul.msk.f32.gmra.mxu1 %vm451_vm15, %v1289_v0  ;;  %1207 = vmatmul.msk.f32.gmra.mxu2 %vm452_vm9, %v1289_v0  ;;  %vm453_vm10 = vcmp.eq.s32.totalorder %v1328_v4, %v1803_v10  ;;  %vm2263_vm11 = vcmp.eq.s32.totalorder %v1765_v42, %v1803_v10 }
 0x299   :  { %v1827_v29 = vpop.permute.xlu1 %439 }
 0x29a   :  { %1200 = vmatmul.msk.f32.gmra.mxu1 %vm453_vm10, %v1289_v0  ;;  %1208 = vmatmul.msk.f32.gmra.mxu2 %vm2263_vm11, %v1289_v0  ;;  %vm2262_vm3 = vcmp.eq.s32.totalorder %v1328_v4, %v1827_v29  ;;  %vm2258_vm4 = vcmp.eq.s32.totalorder %v1765_v42, %v1827_v29 }
 0x29f   :  { %v1851_v3 = vpop.permute.xlu0 %445 }
 0x2a0   :  { %vm2261_vm1 = vcmp.eq.s32.totalorder %v1328_v4, %v1851_v3 }
 0x2a2   :  { %1201 = vmatmul.msk.f32.gmra.mxu1 %vm455_vm5, %v1289_v0  ;;  %1209 = vmatmul.msk.f32.gmra.mxu2 %vm456_vm12, %v1289_v0 }
 0x2aa   :  { %1202 = vmatmul.msk.f32.gmra.mxu1 %vm2262_vm3, %v1289_v0  ;;  %1210 = vmatmul.msk.f32.gmra.mxu2 %vm2258_vm4, %v1289_v0  ;;  %vm2260_vm4 = vcmp.eq.s32.totalorder %v1765_v42, %v1851_v3 }
 0x2b2   :  { %1203 = vmatmul.msk.f32.gmra.mxu1 %vm459_vm13, %v1289_v0  ;;  %1211 = vmatmul.msk.f32.gmra.mxu2 %vm460_vm2, %v1289_v0 }
 0x2ba   :  { %1204 = vmatmul.msk.f32.gmra.mxu1 %vm2261_vm1, %v1289_v0  ;;  %1212 = vmatmul.msk.f32.gmra.mxu2 %vm2260_vm4, %v1289_v0 }
 0x2ed   :  { %v544_v5 = vpop.f32.mrf.mxu1 }
 0x2f3   :  { %v585_v32 = vpop.f32.mrf.mxu2 }
 0x2f4   :  { %v586_v16 = vadd.f32 %v585_v32, %v544_v5 }
 0x2f6   :  { %v609_v17 = vmul.f32 %v586_v16, %v1338_v6 }
 0x2f8   :  { %v617_v8 = vsel %vm2259_vm0, %v609_v17, 0.0 }
 0x2f9   :  { %618 = vadd.xlane.f32.xlu1 %v617_v8 }
 0x307   :  { %v547_v19 = vpop.f32.mrf.mxu1 }
 0x30d   :  { %v588_v38 = vpop.f32.mrf.mxu2 }
 0x30e   :  { %v589_v21 = vadd.f32 %v588_v38, %v547_v19 }
 0x30f   :  { %v550_v43 = vpop.f32.mrf.mxu1 }
 0x310   :  { %v610_v15 = vmul.f32 %v589_v21, %v1348_v7 }
 0x312   :  { %v620_v39 = vsel %vm2259_vm0, %v610_v15, 0.0 }
 0x315   :  { %v591_v31 = vpop.f32.mrf.mxu2 }
 0x316   :  { %v592_v13 = vadd.f32 %v591_v31, %v550_v43 }
 0x317   :  { %v553_v9 = vpop.f32.mrf.mxu1 }
 0x318   :  { %v611_v44 = vmul.f32 %v592_v13, %v1338_v6 }
 0x31a   :  { %v623_v25 = vsel %vm2259_vm0, %v611_v44, 0.0 }
 0x31b   :  { %624 = vadd.xlane.f32.xlu2 %v623_v25 }
 0x31d   :  { %v594_v55 = vpop.f32.mrf.mxu2 }
 0x31e   :  { %v595_v6 = vadd.f32 %v594_v55, %v553_v9 }
 0x31f   :  { %v556_v26 = vpop.f32.mrf.mxu1 }
 0x320   :  { %v612_v40 = vmul.f32 %v595_v6, %v1348_v7 }
 0x322   :  { %v626_v1 = vsel %vm2259_vm0, %v612_v40, 0.0 }
 0x323   :  { %621 = vadd.xlane.f32.xlu2 %v620_v39 }
 0x325   :  { %v597_v41 = vpop.f32.mrf.mxu2 }
 0x326   :  { %v598_v18 = vadd.f32 %v597_v41, %v556_v26 }
 0x327   :  { %v559_v37 = vpop.f32.mrf.mxu1 }
 0x328   :  { %v613_v33 = vmul.f32 %v1253_v58, %v598_v18 }
 0x32a   :  { %v629_v20 = vsel %vm2259_vm0, %v613_v33, 0.0 }
 0x32b   :  { %630 = vadd.xlane.f32.xlu0 %v629_v20 }
 0x32d   :  { %v600_v24 = vpop.f32.mrf.mxu2 }
 0x32e   :  { %v601_v45 = vadd.f32 %v600_v24, %v559_v37 }
 0x32f   :  { %v562_v54 = vpop.f32.mrf.mxu1 }
 0x330   :  { %v614_v60 = vmul.f32 %v1254_v35, %v601_v45 }
 0x332   :  { %v632_v46 = vsel %vm2259_vm0, %v614_v60, 0.0 }
 0x333   :  { %627 = vadd.xlane.f32.xlu0 %v626_v1 }
 0x335   :  { %v603_v50 = vpop.f32.mrf.mxu2 }
 0x336   :  { %v604_v34 = vadd.f32 %v603_v50, %v562_v54 }
 0x337   :  { %v565_v62 = vpop.f32.mrf.mxu1 }
 0x338   :  { %v615_v59 = vmul.f32 %v1253_v58, %v604_v34 }
 0x33a   :  { %v635_v51 = vsel %vm2259_vm0, %v615_v59, 0.0 }
 0x33b   :  { %636 = vadd.xlane.f32.xlu1 %v635_v51 }
 0x33d   :  { %v606_v57 = vpop.f32.mrf.mxu2 }
 0x33e   :  { %v607_v23 = vadd.f32 %v606_v57, %v565_v62 }
 0x340   :  { %v616_v7 = vmul.f32 %v1254_v35, %v607_v23 }
 0x342   :  { %v638_v52 = vsel %vm2259_vm0, %v616_v7, 0.0 }
 0x343   :  { %633 = vadd.xlane.f32.xlu1 %v632_v46  ;;  %639 = vadd.xlane.f32.xlu2 %v638_v52 }
 0x36c   :  { %v619_v12 = vpop.xlane.xlu1 %618 }
 0x36d   :  { %v649_v0 = vmul.f32 0.70710677, %v619_v12 }
 0x36f   :  { %v657_v5 = vmul.f32 %v649_v0, %v649_v0 }
 0x371   :  { %v658_v32 = vmin.f32 %v657_v5, 16.0 }
 0x373   :  { %v659_v16 = vmul.f32 2.1237322e-06, %v658_v32  ;;  %v670_v17 = vmul.f32 3.8918573e-05, %v658_v32 }
 0x375   :  { %v660_v8 = vadd.f32 0.00028619796, %v659_v16  ;;  %v671_v19 = vadd.f32 0.001143296, %v670_v17 }
 0x377   :  { %v661_v38 = vmul.f32 %v660_v8, %v658_v32  ;;  %v672_v43 = vmul.f32 %v671_v19, %v658_v32 }
 0x379   :  { %v673_v31 = vadd.f32 0.014752088, %v672_v43  ;;  %v662_v13 = vadd.f32 0.0036580483, %v661_v38  ;;  %v641_v43 = vmul.f32 0.5, %v619_v12 }
 0x37b   :  { %v674_v9 = vmul.f32 %v673_v31, %v658_v32  ;;  %v663_v21 = vmul.f32 %v662_v13, %v658_v32 }
 0x37d   :  { %v675_v44 = vadd.f32 0.112945676, %v674_v9  ;;  %v664_v15 = vadd.f32 0.05243302, %v663_v21 }
 0x37f   :  { %v676_v25 = vmul.f32 %v675_v44, %v658_v32  ;;  %v665_v41 = vmul.f32 %v664_v15, %v658_v32  ;;  %v993_v44 = vmax.f32 %v1431_v49, 0.0 }
 0x381   :  { %v677_v55 = vadd.f32 0.4994258, %v676_v25  ;;  %v666_v18 = vadd.f32 0.18741608, %v665_v41 }
 0x383   :  { %v678_v26 = vmul.f32 %v677_v55, %v658_v32  ;;  %v667_v33 = vmul.f32 %v666_v18, %v658_v32 }
 0x385   :  { %v679_v39 = vadd.f32 1.0, %v678_v26  ;;  %v668_v54 = vadd.f32 1.1283791, %v667_v33 }
 0x387   :  { %1237 = vrcp.f32 %v679_v39  ;;  %v691_v40 = vand.u32 2147483648, %v679_v39  ;;  %v689_v34 = vand.u32 2147483647, %v679_v39  ;;  %vm685_vm4 = vweird.f32 %v679_v39 }
 0x388   :  { %v669_v23 = vmul.f32 %v668_v54, %v649_v0 }
 0x389   :  { %v692_v51 = vor.u32 1.1754944e-38, %v691_v40  ;;  %vm690_vm3 = vcmp.eq.f32.partialorder %v689_v34, 8.507059e+37 }
 0x38d   :  { %v1238_v58 = vpop.eup %1237 }
 0x38e   :  { %v681_v37 = vmul.f32 %v1238_v58, %v679_v39  ;;  %v1881_v6 = vpop.xlane.xlu2 %624  ;;  %vm686_vm0 = vweird.f32 %v1238_v58 }
 0x38f   :  { %v1884_v20 = vmul.f32 0.70710677, %v1881_v6  ;;  %vm687_vm1 = vmor %vm685_vm4, %vm686_vm0 }
 0x390   :  { %v682_v24 = vsub.f32 1.0, %v681_v37 }
 0x391   :  { %v737_v1 = vmul.f32 %v1884_v20, %v1884_v20 }
 0x392   :  { %v683_v50 = vmul.f32 %v1238_v58, %v682_v24 }
 0x393   :  { %v1888_v59 = vmin.f32 %v737_v1, 16.0 }
 0x394   :  { %v684_v45 = vadd.f32 %v1238_v58, %v683_v50 }
 0x395   :  { %v739_v62 = vmul.f32 2.1237322e-06, %v1888_v59  ;;  %v750_v57 = vmul.f32 3.8918573e-05, %v1888_v59 }
 0x396   :  { %v688_v35 = vsel %vm687_vm1, %v1238_v58, %v684_v45  ;;  %v1892_v60 = vpop.xlane.xlu2 %621 }
 0x397   :  { %v693_v7 = vsel %vm690_vm3, %v692_v51, %v688_v35  ;;  %v740_v46 = vadd.f32 0.00028619796, %v739_v62  ;;  %v751_v52 = vadd.f32 0.001143296, %v750_v57  ;;  %v1895_v32 = vmul.f32 0.70710677, %v1892_v60 }
 0x398   :  { %v694_v5 = vmul.f32 %v693_v7, %v669_v23 }
 0x399   :  { %v741_v16 = vmul.f32 %v740_v46, %v1888_v59  ;;  %v752_v17 = vmul.f32 %v751_v52, %v1888_v59  ;;  %v697_v19 = vmul.f32 %v1895_v32, %v1895_v32 }
 0x39a   :  { %v1213_v8 = vclamps-f32 %v694_v5, 1.0 }
 0x39b   :  { %v742_v0 = vadd.f32 0.0036580483, %v741_v16  ;;  %v753_v38 = vadd.f32 0.014752088, %v752_v17  ;;  %v1901_v13 = vmin.f32 %v697_v19, 16.0 }
 0x39c   :  { %v977_v31 = vadd.f32 1.0, %v1213_v8 }
 0x39d   :  { %v754_v9 = vmul.f32 %v753_v38, %v1888_v59  ;;  %v699_v25 = vmul.f32 2.1237322e-06, %v1901_v13  ;;  %v710_v55 = vmul.f32 3.8918573e-05, %v1901_v13  ;;  %v743_v26 = vmul.f32 %v742_v0, %v1888_v59 }
 0x39e   :  { %v985_v21 = vmul.f32 %v977_v31, %v641_v43  ;;  %v1907_v15 = vpop.xlane.xlu0 %630 }
 0x39f   :  { %v755_v39 = vadd.f32 0.112945676, %v754_v9  ;;  %v700_v41 = vadd.f32 0.00028619796, %v699_v25  ;;  %v711_v18 = vadd.f32 0.001143296, %v710_v55 }
 0x3a0   :  { %v1911_v12 = vmul.f32 0.70710677, %v1907_v15  ;;  %v1001_v58 = vmul.f32 %v993_v44, %v985_v21  ;;  %v744_v40 = vadd.f32 0.05243302, %v743_v26 }
 0x3a1   :  { %v756_v33 = vmul.f32 %v755_v39, %v1888_v59  ;;  %v701_v49 = vmul.f32 %v700_v41, %v1901_v13  ;;  %v712_v37 = vmul.f32 %v711_v18, %v1901_v13 }
 0x3a2   :  { %v817_v24 = vmul.f32 %v1911_v12, %v1911_v12  ;;  %1011 = vperm.xlu0 %1234, %v1001_v58   ;;  %v745_v35 = vmul.f32 %v744_v40, %v1888_v59  ;;  %v995_v58 = vmax.f32 %v1426_v47, 0.0 }
 0x3a3   :  { %v757_v1 = vadd.f32 0.4994258, %v756_v33  ;;  %v702_v54 = vadd.f32 0.0036580483, %v701_v49  ;;  %v713_v50 = vadd.f32 0.014752088, %v712_v37 }
 0x3a4   :  { %v1918_v34 = vmin.f32 %v817_v24, 16.0  ;;  %v746_v0 = vadd.f32 0.18741608, %v745_v35 }
 0x3a5   :  { %v758_v45 = vmul.f32 %v757_v1, %v1888_v59  ;;  %v703_v51 = vmul.f32 %v702_v54, %v1901_v13  ;;  %v714_v62 = vmul.f32 %v713_v50, %v1901_v13  ;;  %v643_v50 = vmul.f32 0.5, %v1881_v6 }
 0x3a6   :  { %v819_v57 = vmul.f32 2.1237322e-06, %v1918_v34  ;;  %v1924_v23 = vpop.xlane.xlu0 %627  ;;  %v830_v46 = vmul.f32 3.8918573e-05, %v1918_v34  ;;  %v747_v39 = vmul.f32 %v746_v0, %v1888_v59 }
 0x3a7   :  { %v759_v7 = vadd.f32 1.0, %v758_v45  ;;  %v1929_v52 = vmul.f32 0.70710677, %v1924_v23  ;;  %v715_v5 = vadd.f32 0.112945676, %v714_v62 }
 0x3a8   :  { %v820_v16 = vadd.f32 0.00028619796, %v819_v57  ;;  %v704_v17 = vadd.f32 0.05243302, %v703_v51  ;;  %v831_v38 = vadd.f32 0.001143296, %v830_v46 }
 0x3a9   :  { %1239 = vrcp.f32 %v759_v7  ;;  %v716_v8 = vmul.f32 %v715_v5, %v1901_v13  ;;  %v777_v43 = vmul.f32 %v1929_v52, %v1929_v52  ;;  %v769_v24 = vand.u32 2147483647, %v759_v7 }
 0x3aa   :  { %v821_v19 = vmul.f32 %v820_v16, %v1918_v34  ;;  %v705_v9 = vmul.f32 %v704_v17, %v1901_v13  ;;  %v832_v21 = vmul.f32 %v831_v38, %v1918_v34  ;;  %v771_v51 = vand.u32 2147483648, %v759_v7 }
 0x3ab   :  { %v717_v31 = vadd.f32 0.4994258, %v716_v8  ;;  %v1937_v25 = vmin.f32 %v777_v43, 16.0  ;;  %v748_v59 = vadd.f32 1.1283791, %v747_v39  ;;  %vm765_vm3 = vweird.f32 %v759_v7 }
 0x3ac   :  { %v822_v44 = vadd.f32 0.0036580483, %v821_v19  ;;  %v833_v41 = vadd.f32 0.014752088, %v832_v21  ;;  %v706_v40 = vadd.f32 0.18741608, %v705_v9 }
 0x3ad   :  { %v718_v55 = vmul.f32 %v717_v31, %v1901_v13  ;;  %v790_v18 = vmul.f32 3.8918573e-05, %v1937_v25  ;;  %v779_v57 = vmul.f32 2.1237322e-06, %v1937_v25  ;;  %vm1953_vm4 = vcmp.eq.f32.partialorder %v769_v24, 8.507059e+37 }
 0x3ae   :  { %v823_v37 = vmul.f32 %v822_v44, %v1918_v34  ;;  %v834_v1 = vmul.f32 %v833_v41, %v1918_v34  ;;  %v1950_v35 = vpop.xlane.xlu1 %636  ;;  %v707_v6 = vmul.f32 %v706_v40, %v1901_v13  ;;  %v772_v0 = vor.u32 1.1754944e-38, %v771_v51 }
 0x3af   :  { %v1240_v26 = vpop.eup %1239  ;;  %v1943_v49 = vadd.f32 1.0, %v718_v55  ;;  %v791_v54 = vadd.f32 0.001143296, %v790_v18  ;;  %v1960_v43 = vmul.f32 0.70710677, %v1950_v35  ;;  %v749_v9 = vmul.f32 %v748_v59, %v1884_v20 }
 0x3b0   :  { %v761_v33 = vmul.f32 %v1240_v26, %v759_v7  ;;  %v835_v62 = vadd.f32 0.112945676, %v834_v1  ;;  %vm766_vm0 = vweird.f32 %v1240_v26  ;;  %v824_v5 = vadd.f32 0.05243302, %v823_v37 }
 0x3b1   :  { %1241 = vrcp.f32 %v1943_v49  ;;  %v792_v16 = vmul.f32 %v791_v54, %v1937_v25  ;;  %vm767_vm1 = vmor %vm765_vm3, %vm766_vm0  ;;  %v780_v44 = vadd.f32 0.00028619796, %v779_v57  ;;  %v897_v18 = vmul.f32 %v1960_v43, %v1960_v43 }
 0x3b2   :  { %v762_v45 = vsub.f32 1.0, %v761_v33  ;;  %v836_v8 = vmul.f32 %v835_v62, %v1918_v34  ;;  %v825_v39 = vmul.f32 %v824_v5, %v1918_v34  ;;  %v708_v37 = vadd.f32 1.1283791, %v707_v6 }
 0x3b3   :  { %v793_v38 = vadd.f32 0.014752088, %v792_v16  ;;  %v729_v24 = vand.u32 2147483647, %v1943_v49  ;;  %v731_v1 = vand.u32 2147483648, %v1943_v49  ;;  %v781_v51 = vmul.f32 %v780_v44, %v1937_v25 }
 0x3b4   :  { %v763_v46 = vmul.f32 %v1240_v26, %v762_v45  ;;  %v837_v7 = vadd.f32 0.4994258, %v836_v8  ;;  %v1979_v59 = vmin.f32 %v897_v18, 16.0  ;;  %vm725_vm3 = vweird.f32 %v1943_v49 }
 0x3b5   :  { %v794_v41 = vmul.f32 %v793_v38, %v1937_v25 }
 0x3b6   :  { %v764_v19 = vadd.f32 %v1240_v26, %v763_v46  ;;  %v1962_v31 = vpop.xlane.xlu2 %639  ;;  %v826_v46 = vadd.f32 0.18741608, %v825_v39  ;;  %v899_v6 = vmul.f32 2.1237322e-06, %v1979_v59  ;;  %v910_v8 = vmul.f32 3.8918573e-05, %v1979_v59 }
 0x3b7   :  { %v1966_v21 = vmul.f32 0.70710677, %v1962_v31  ;;  %v1242_v55 = vpop.eup %1241  ;;  %v795_v54 = vadd.f32 0.112945676, %v794_v41 }
 0x3b8   :  { %v768_v13 = vsel %vm767_vm1, %v1240_v26, %v764_v19  ;;  %v721_v20 = vmul.f32 %v1242_v55, %v1943_v49  ;;  %v838_v26 = vmul.f32 %v837_v7, %v1918_v34  ;;  %vm726_vm0 = vweird.f32 %v1242_v55 }
 0x3b9   :  { %v773_v33 = vsel %vm1953_vm4, %v772_v0, %v768_v13  ;;  %v937_v62 = vmul.f32 %v1966_v21, %v1966_v21  ;;  %v796_v16 = vmul.f32 %v795_v54, %v1937_v25  ;;  %v709_v0 = vmul.f32 %v708_v37, %v1895_v32  ;;  %vm727_vm1 = vmor %vm725_vm3, %vm726_vm0 }
 0x3ba   :  { %v774_v40 = vmul.f32 %v773_v33, %v749_v9  ;;  %v722_v45 = vsub.f32 1.0, %v721_v20  ;;  %v1983_v5 = vadd.f32 1.0, %v838_v26  ;;  %vm730_vm4 = vcmp.eq.f32.partialorder %v729_v24, 8.507059e+37 }
 0x3bb   :  { %v1990_v38 = vmin.f32 %v937_v62, 16.0  ;;  %v797_v7 = vadd.f32 0.4994258, %v796_v16  ;;  %v732_v13 = vor.u32 1.1754944e-38, %v731_v1  ;;  %v900_v39 = vadd.f32 0.00028619796, %v899_v6 }
 0x3bc   :  { %v1215_v57 = vclamps-f32 %v774_v40, 1.0  ;;  %v723_v17 = vmul.f32 %v1242_v55, %v722_v45  ;;  %1243 = vrcp.f32 %v1983_v5  ;;  %v911_v41 = vadd.f32 0.001143296, %v910_v8 }
 0x3bd   :  { %v827_v33 = vmul.f32 %v826_v46, %v1918_v34  ;;  %v782_v20 = vadd.f32 0.0036580483, %v781_v51  ;;  %v798_v32 = vmul.f32 %v797_v7, %v1937_v25  ;;  %v901_v40 = vmul.f32 %v900_v39, %v1979_v59 }
 0x3be   :  { %v979_v19 = vadd.f32 1.0, %v1215_v57  ;;  %v724_v9 = vadd.f32 %v1242_v55, %v723_v17  ;;  %v912_v26 = vmul.f32 %v911_v41, %v1979_v59  ;;  %v939_v49 = vmul.f32 2.1237322e-06, %v1990_v38 }
 0x3bf   :  { %v1998_v54 = vadd.f32 1.0, %v798_v32  ;;  %v902_v1 = vadd.f32 0.0036580483, %v901_v40  ;;  %v994_v51 = vmax.f32 %v1466_v11, 0.0  ;;  %v642_v16 = vmul.f32 0.5, %v1892_v60 }
 0x3c0   :  { %v987_v44 = vmul.f32 %v979_v19, %v643_v50  ;;  %v728_v18 = vsel %vm727_vm1, %v1242_v55, %v724_v9  ;;  %v913_v45 = vadd.f32 0.014752088, %v912_v26  ;;  %v950_v55 = vmul.f32 3.8918573e-05, %v1990_v38 }
 0x3c1   :  { %v733_v37 = vsel %vm730_vm4, %v732_v13, %v728_v18  ;;  %v940_v46 = vadd.f32 0.00028619796, %v939_v49  ;;  %v828_v17 = vadd.f32 1.1283791, %v827_v33  ;;  %v783_v6 = vmul.f32 %v782_v20, %v1937_v25 }
 0x3c2   :  { %v734_v24 = vmul.f32 %v733_v37, %v709_v0  ;;  %v1244_v50 = vpop.eup %1243  ;;  %v1003_v34 = vmul.f32 %v995_v58, %v987_v44  ;;  %1245 = vrcp.f32 %v1998_v54  ;;  %v849_v0 = vand.u32 2147483647, %v1983_v5  ;;  %v2010_v58 = vpop.xlane.xlu1 %633 }
 0x3c3   :  { %v841_v57 = vmul.f32 %v1244_v50, %v1983_v5  ;;  %v914_v47 = vmul.f32 %v913_v45, %v1979_v59  ;;  %vm846_vm0 = vweird.f32 %v1244_v50  ;;  %v851_v11 = vand.u32 2147483648, %v1983_v5 }
 0x3c4   :  { %v1214_v62 = vclamps-f32 %v734_v24, 1.0  ;;  %1021 = vperm.xlu1 %1235, %v1003_v34   ;;  %v903_v9 = vmul.f32 %v902_v1, %v1979_v59  ;;  %v951_v60 = vadd.f32 0.001143296, %v950_v55  ;;  %v941_v39 = vmul.f32 %v940_v46, %v1990_v38 }
 0x3c5   :  { %v842_v19 = vsub.f32 1.0, %v841_v57  ;;  %v915_v13 = vadd.f32 0.112945676, %v914_v47  ;;  %v784_v41 = vadd.f32 0.05243302, %v783_v6  ;;  %vm845_vm3 = vweird.f32 %v1983_v5 }
 0x3c6   :  { %v978_v8 = vadd.f32 1.0, %v1214_v62  ;;  %v952_v18 = vmul.f32 %v951_v60, %v1990_v38  ;;  %v2017_v33 = vmul.f32 0.70710677, %v2010_v58  ;;  %v829_v26 = vmul.f32 %v828_v17, %v1911_v12  ;;  %vm847_vm4 = vmor %vm845_vm3, %vm846_vm0 }
 0x3c7   :  { %v843_v44 = vmul.f32 %v1244_v50, %v842_v19  ;;  %v916_v32 = vmul.f32 %v915_v13, %v1979_v59  ;;  %v852_v49 = vor.u32 1.1754944e-38, %v851_v11  ;;  %vm850_vm1 = vcmp.eq.f32.partialorder %v849_v0, 8.507059e+37 }
 0x3c8   :  { %v986_v7 = vmul.f32 %v978_v8, %v642_v16  ;;  %v2021_v40 = vpop.eup %1245  ;;  %v953_v24 = vadd.f32 0.014752088, %v952_v18  ;;  %v857_v1 = vmul.f32 %v2017_v33, %v2017_v33  ;;  %v904_v55 = vadd.f32 0.05243302, %v903_v9 }
 0x3c9   :  { %v844_v20 = vadd.f32 %v1244_v50, %v843_v44  ;;  %v942_v34 = vadd.f32 0.0036580483, %v941_v39  ;;  %v801_v5 = vmul.f32 %v2021_v40, %v1998_v54  ;;  %v785_v16 = vmul.f32 %v784_v41, %v1937_v25 }
 0x3ca   :  { %v1002_v37 = vmul.f32 %v994_v51, %v986_v7  ;;  %v917_v51 = vadd.f32 0.4994258, %v916_v32  ;;  %v954_v57 = vmul.f32 %v953_v24, %v1990_v38  ;;  %v2030_v46 = vmin.f32 %v857_v1, 16.0 }
 0x3cb   :  { %v848_v45 = vsel %vm847_vm4, %v1244_v50, %v844_v20  ;;  %v905_v8 = vmul.f32 %v904_v55, %v1979_v59  ;;  %v943_v19 = vmul.f32 %v942_v34, %v1990_v38  ;;  %v802_v0 = vsub.f32 1.0, %v801_v5 }
 0x3cc   :  { %v853_v62 = vsel %vm850_vm1, %v852_v49, %v848_v45  ;;  %1016 = vperm.xlu1 %1235, %v1002_v37   ;;  %v918_v17 = vmul.f32 %v917_v51, %v1979_v59  ;;  %v955_v6 = vadd.f32 0.112945676, %v954_v57  ;;  %v859_v9 = vmul.f32 2.1237322e-06, %v2030_v46 }
 0x3cd   :  { %v854_v12 = vmul.f32 %v853_v62, %v829_v26  ;;  %v645_v60 = vmul.f32 0.5, %v1907_v15  ;;  %v870_v44 = vmul.f32 3.8918573e-05, %v2030_v46  ;;  %v786_v13 = vadd.f32 0.18741608, %v785_v16 }
 0x3ce   :  { %v919_v47 = vadd.f32 1.0, %v918_v17  ;;  %v956_v11 = vmul.f32 %v955_v6, %v1990_v38  ;;  %v944_v41 = vadd.f32 0.05243302, %v943_v19  ;;  %v997_v20 = vmax.f32 %v1451_v61, 0.0 }
 0x3cf   :  { %v1217_v50 = vclamps-f32 %v854_v12, 1.0  ;;  %v803_v32 = vmul.f32 %v2021_v40, %v802_v0  ;;  %v906_v37 = vadd.f32 0.18741608, %v905_v8  ;;  %v860_v26 = vadd.f32 0.00028619796, %v859_v9 }
 0x3d0   :  { %1247 = vrcp.f32 %v919_v47  ;;  %v957_v18 = vadd.f32 0.4994258, %v956_v11  ;;  %v871_v24 = vadd.f32 0.001143296, %v870_v44  ;;  %v787_v1 = vmul.f32 %v786_v13, %v1937_v25 }
 0x3d1   :  { %v981_v7 = vadd.f32 1.0, %v1217_v50  ;;  %v811_v45 = vand.u32 2147483648, %v1998_v54  ;;  %v945_v55 = vmul.f32 %v944_v41, %v1990_v38  ;;  %v804_v61 = vadd.f32 %v2021_v40, %v803_v32 }
 0x3d2   :  { %v958_v49 = vmul.f32 %v957_v18, %v1990_v38  ;;  %v872_v62 = vmul.f32 %v871_v24, %v2030_v46  ;;  %vm806_vm0 = vweird.f32 %v2021_v40  ;;  %v907_v51 = vmul.f32 %v906_v37, %v1979_v59 }
 0x3d3   :  { %v989_v39 = vmul.f32 %v981_v7, %v645_v60  ;;  %v861_v57 = vmul.f32 %v860_v26, %v2030_v46  ;;  %v788_v12 = vadd.f32 1.1283791, %v787_v1  ;;  %vm805_vm3 = vweird.f32 %v1998_v54 }
 0x3d4   :  { %v2046_v34 = vadd.f32 1.0, %v958_v49  ;;  %v809_v16 = vand.u32 2147483647, %v1998_v54  ;;  %vm2056_vm4 = vmor %vm805_vm3, %vm806_vm0  ;;  %v812_v6 = vor.u32 1.1754944e-38, %v811_v45  ;;  %v946_v8 = vadd.f32 0.18741608, %v945_v55 }
 0x3d5   :  { %v1005_v15 = vmul.f32 %v997_v20, %v989_v39  ;;  %v873_v19 = vadd.f32 0.014752088, %v872_v62  ;;  %v808_v59 = vsel %vm2056_vm4, %v2021_v40, %v804_v61  ;;  %v908_v0 = vadd.f32 1.1283791, %v907_v51 }
 0x3d6   :  { %v1248_v5 = vpop.eup %1247  ;;  %1249 = vrcp.f32 %v2046_v34  ;;  %v931_v11 = vand.u32 2147483648, %v919_v47  ;;  %v862_v9 = vadd.f32 0.0036580483, %v861_v57  ;;  %v929_v7 = vand.u32 2147483647, %v919_v47 }
 0x3d7   :  { %1031 = vperm.xlu2 %1236, %v1005_v15   ;;  %v921_v25 = vmul.f32 %v1248_v5, %v919_v47  ;;  %vm926_vm1 = vweird.f32 %v1248_v5  ;;  %v874_v54 = vmul.f32 %v873_v19, %v2030_v46  ;;  %vm810_vm0 = vcmp.eq.f32.partialorder %v809_v16, 8.507059e+37 }
 0x3d8   :  { %vm925_vm3 = vweird.f32 %v919_v47  ;;  %v813_v13 = vsel %vm810_vm0, %v812_v6, %v808_v59  ;;  %v947_v41 = vmul.f32 %v946_v8, %v1990_v38  ;;  %v789_v20 = vmul.f32 %v788_v12, %v1929_v52 }
 0x3d9   :  { %v922_v50 = vsub.f32 1.0, %v921_v25  ;;  %v875_v18 = vadd.f32 0.112945676, %v874_v54  ;;  %vm927_vm11 = vmor %vm925_vm3, %vm926_vm1  ;;  %v932_v40 = vor.u32 1.1754944e-38, %v931_v11  ;;  %v863_v37 = vmul.f32 %v862_v9, %v2030_v46 }
 0x3da   :  { %v909_v26 = vmul.f32 %v908_v0, %v1960_v43  ;;  %vm930_vm4 = vcmp.eq.f32.partialorder %v929_v7, 8.507059e+37  ;;  %v814_v24 = vmul.f32 %v813_v13, %v789_v20  ;;  %v948_v38 = vadd.f32 1.1283791, %v947_v41 }
 0x3db   :  { %v923_v60 = vmul.f32 %v1248_v5, %v922_v50  ;;  %v876_v47 = vmul.f32 %v875_v18, %v2030_v46  ;;  %v971_v55 = vand.u32 2147483648, %v2046_v34  ;;  %v969_v61 = vand.u32 2147483647, %v2046_v34 }
 0x3dc   :  { %v1250_v44 = vpop.eup %1249  ;;  %v864_v51 = vadd.f32 0.05243302, %v863_v37  ;;  %v1216_v12 = vclamps-f32 %v814_v24, 1.0  ;;  %v949_v50 = vmul.f32 %v948_v38, %v1966_v21  ;;  %v999_v59 = vmax.f32 %v1474_v14, 0.0 }
 0x3dd   :  { %v924_v39 = vadd.f32 %v1248_v5, %v923_v60  ;;  %v961_v32 = vmul.f32 %v1250_v44, %v2046_v34  ;;  %v877_v52 = vadd.f32 0.4994258, %v876_v47  ;;  %vm966_vm1 = vweird.f32 %v1250_v44 }
 0x3de   :  { %v972_v17 = vor.u32 1.1754944e-38, %v971_v55  ;;  %vm970_vm3 = vcmp.eq.f32.partialorder %v969_v61, 8.507059e+37  ;;  %v865_v19 = vmul.f32 %v864_v51, %v2030_v46  ;;  %v980_v9 = vadd.f32 1.0, %v1216_v12  ;;  %v1092_v12 = vld [vmem:[%s2256_s3 + $0x58] sm:$0xff] }
 0x3df   :  { %v928_v49 = vsel %vm927_vm11, %v1248_v5, %v924_v39  ;;  %v962_v15 = vsub.f32 1.0, %v961_v32  ;;  %v878_v43 = vmul.f32 %v877_v52, %v2030_v46  ;;  %v647_v5 = vmul.f32 0.5, %v1950_v35 }
 0x3e0   :  { %v933_v1 = vsel %vm930_vm4, %v932_v40, %v928_v49  ;;  %vm965_vm11 = vweird.f32 %v2046_v34  ;;  %v421_v34 = vadd.f32 %v1515_v48, %v1487_v22  ;;  %v866_v54 = vadd.f32 0.18741608, %v865_v19 }
 0x3e1   :  { %v934_v45 = vmul.f32 %v933_v1, %v909_v26  ;;  %v963_v62 = vmul.f32 %v1250_v44, %v962_v15  ;;  %vm967_vm0 = vmor %vm965_vm11, %vm966_vm1  ;;  %v879_v6 = vadd.f32 1.0, %v878_v43  ;;  %v644_v13 = vmul.f32 0.5, %v1924_v23  ;;  %v1110_v43 = vld [vmem:[%s2256_s3 + $0xe8] sm:$0xff] }
 0x3e2   :  { %v648_v21 = vmul.f32 0.5, %v1962_v31  ;;  %v1000_v14 = vmax.f32 %v421_v34, 0.0  ;;  %v867_v20 = vmul.f32 %v866_v54, %v2030_v46  ;;  %v996_v32 = vmax.f32 %v1504_v36, 0.0 }
 0x3e3   :  { %v1219_v57 = vclamps-f32 %v934_v45, 1.0  ;;  %v964_v25 = vadd.f32 %v1250_v44, %v963_v62  ;;  %1251 = vrcp.f32 %v879_v6  ;;  %v988_v41 = vmul.f32 %v980_v9, %v644_v13 }
 0x3e4   :  { %v891_v22 = vand.u32 2147483648, %v879_v6  ;;  %v868_v49 = vadd.f32 1.1283791, %v867_v20  ;;  %v889_v23 = vand.u32 2147483647, %v879_v6  ;;  %vm885_vm1 = vweird.f32 %v879_v6  ;;  %v1106_v20 = vld [vmem:[%s2256_s3 + $0xc8] sm:$0xff] }
 0x3e5   :  { %v983_v16 = vadd.f32 1.0, %v1219_v57  ;;  %v968_v8 = vsel %vm967_vm0, %v1250_v44, %v964_v25  ;;  %v1004_v48 = vmul.f32 %v996_v32, %v988_v41  ;;  %v329_v45 = vadd.f32 %v1519_v27, %v1524_v53  ;;  %v1096_v57 = vld [vmem:[%s2256_s3 + $0x78] sm:$0xff]  ;;  %v1095_v27 = vld [vmem:[%s2256_s3 + $0x70] sm:$0xff]  ;;  %v1109_v25 = vld [vmem:[%s2256_s3 + $0xe0] sm:$0xff] }
 0x3e6   :  { %v973_v11 = vsel %vm970_vm3, %v972_v17, %v968_v8  ;;  %v892_v24 = vor.u32 1.1754944e-38, %v891_v22  ;;  %v869_v1 = vmul.f32 %v868_v49, %v2017_v33  ;;  %vm890_vm0 = vcmp.eq.f32.partialorder %v889_v23, 8.507059e+37  ;;  %v1112_v33 = vld [vmem:[%s2256_s3 + $0xf8] sm:$0xff]  ;;  %1113 = vmatpush.msra.mxu3 %v1096_v57  ;;  %v1111_v53 = vld [vmem:[%s2256_s3 + $0xf0] sm:$0xff]  ;;  %v1102_v49 = vld [vmem:[%s2256_s3 + $0xa8] sm:$0xff] }
 0x3e7   :  { %v991_v0 = vmul.f32 %v983_v16, %v647_v5  ;;  %v974_v35 = vmul.f32 %v973_v11, %v949_v50  ;;  %v646_v55 = vmul.f32 0.5, %v2010_v58  ;;  %v998_v62 = vmax.f32 %v329_v45, 0.0  ;;  %1136 = vmatpush.msrb.mxu0 %v1112_v33  ;;  %v1094_v58 = vld [vmem:[%s2256_s3 + $0x68] sm:$0xff]  ;;  %v1093_v5 = vld [vmem:[%s2256_s3 + $0x60] sm:$0xff]  ;;  %v1108_v16 = vld [vmem:[%s2256_s3 + $0xd8] sm:$0xff] }
 0x3e8   :  { %1114 = vmatpush.msra.mxu3 %v1095_v27  ;;  %v1091_v17 = vld [vmem:[%s2256_s3 + $0x50] sm:$0xff]  ;;  %v1290_v8 = vmov 0.0   ;;  %v1088_v32 = vld [vmem:[%s2256_s3 + $0x38] sm:$0xff]  ;;  %v1101_v23 = vld [vmem:[%s2256_s3 + $0xa0] sm:$0xff] }
 0x3e9   :  { %v1007_v60 = vmul.f32 %v999_v59, %v991_v0  ;;  %v1220_v7 = vclamps-f32 %v974_v35, 1.0  ;;  %v1252_v39 = vpop.eup %1251  ;;  %1137 = vmatpush.msrb.mxu0 %v1111_v53  ;;  %v1181_v19 = vsel %vm447_vm6, 1.0, %v1290_v8  ;;  %v1182_v59 = vsel %vm448_vm7, 1.0, %v1290_v8  ;;  %v1103_v22 = vld [vmem:[%s2256_s3 + $0xb0] sm:$0xff]  ;;  %v1081_v45 = vld [vmem:[%s2256_s3] sm:$0xff] }
 0x3ea   :  { %v881_v40 = vmul.f32 %v1252_v39, %v879_v6  ;;  %vm886_vm4 = vweird.f32 %v1252_v39  ;;  %1115 = vmatpush.msra.mxu3 %v1094_v58  ;;  %v1107_v6 = vld [vmem:[%s2256_s3 + $0xd0] sm:$0xff]  ;;  %v1185_v11 = vsel %vm451_vm15, 1.0, %v1290_v8  ;;  %v1186_v35 = vsel %vm452_vm9, 1.0, %v1290_v8 }
 0x3eb   :  { %1041 = vperm.xlu0 %1234, %v1007_v60   ;;  %v984_v44 = vadd.f32 1.0, %v1220_v7  ;;  %vm887_vm11 = vmor %vm885_vm1, %vm886_vm4  ;;  %1138 = vmatpush.msrb.mxu0 %v1110_v43  ;;  %v1189_v28 = vsel %vm455_vm5, 1.0, %v1290_v8  ;;  %v1190_v13 = vsel %vm456_vm12, 1.0, %v1290_v8  ;;  %v1183_v53 = vsel %vm449_vm8, 1.0, %v1290_v8 }
 0x3ec   :  { %v882_v37 = vsub.f32 1.0, %v881_v40  ;;  %1116 = vmatpush.msra.mxu3 %v1093_v5  ;;  %v1089_v40 = vld [vmem:[%s2256_s3 + $0x40] sm:$0xff]  ;;  %v1184_v58 = vsel %vm450_vm14, 1.0, %v1290_v8  ;;  %v1187_v43 = vsel %vm453_vm10, 1.0, %v1290_v8  ;;  %vm2268_vm6 = vcmp.eq.s32.totalorder %v1765_v42, %v1803_v10 }
 0x3ed   :  { %v992_v18 = vmul.f32 %v984_v44, %v648_v21  ;;  %1139 = vmatpush.msrb.mxu0 %v1109_v25  ;;  %v1188_v5 = vsel %vm2268_vm6, 1.0, %v1290_v8  ;;  %vm2269_vm7 = vcmp.eq.s32.totalorder %v1328_v4, %v1827_v29  ;;  %vm2270_vm8 = vcmp.eq.s32.totalorder %v1765_v42, %v1827_v29 }
 0x3ee   :  { %v883_v47 = vmul.f32 %v1252_v39, %v882_v37  ;;  %1117 = vmatpush.msra.mxu3 %v1092_v12  ;;  %v1104_v37 = vld [vmem:[%s2256_s3 + $0xb8] sm:$0xff]  ;;  %v1191_v56 = vsel %vm2269_vm7, 1.0, %v1290_v8  ;;  %vm2271_vm14 = vcmp.eq.s32.totalorder %v1328_v4, %v1851_v3  ;;  %vm2272_vm15 = vcmp.eq.s32.totalorder %v1765_v42, %v1851_v3 }
 0x3ef   :  { %v1008_v26 = vmul.f32 %v1000_v14, %v992_v18  ;;  %1140 = vmatpush.msrb.mxu0 %v1108_v16  ;;  %v1090_v18 = vld [vmem:[%s2256_s3 + $0x48] sm:$0xff]  ;;  %vm2273_vm9 = vcmask 261120  }
 0x3f0   :  { %v884_v31 = vadd.f32 %v1252_v39, %v883_v47  ;;  %1118 = vmatpush.msra.mxu3 %v1091_v17  ;;  %v1085_v47 = vld [vmem:[%s2256_s3 + $0x20] sm:$0xff]  ;;  %vm2274_vm10 = vmmov %vm2273_vm9 }
 0x3f1   :  { %1046 = vperm.xlu1 %1235, %v1008_v26   ;;  %1141 = vmatpush.msrb.mxu0 %v1107_v6  ;;  %v1087_v26 = vld [vmem:[%s2256_s3 + $0x30] sm:$0xff] }
 0x3f2   :  { %v888_v46 = vsel %vm887_vm11, %v1252_v39, %v884_v31  ;;  %1119 = vmatpush.msra.mxu3 %v1090_v18  ;;  %v1084_v31 = vld [vmem:[%s2256_s3 + $0x18] sm:$0xff] }
 0x3f3   :  { %1026 = vperm.xlu0 %1234, %v1004_v48   ;;  %v893_v15 = vsel %vm890_vm0, %v892_v24, %v888_v46  ;;  %1142 = vmatpush.msrb.mxu0 %v1106_v20  ;;  %v1086_v48 = vld [vmem:[%s2256_s3 + $0x28] sm:$0xff]  ;;  %v1100_v24 = vld [vmem:[%s2256_s3 + $0x98] sm:$0xff]  ;;  %v1099_v46 = vld [vmem:[%s2256_s3 + $0x90] sm:$0xff] }
 0x3f4   :  { %v894_v36 = vmul.f32 %v893_v15, %v869_v1  ;;  %1120 = vmatpush.msra.mxu3 %v1089_v40  ;;  %v1083_v1 = vld [vmem:[%s2256_s3 + $0x10] sm:$0xff]  ;;  %v1082_v15 = vld [vmem:[%s2256_s3 + $0x8] sm:$0xff] }
 0x3f5   :  { %1143 = vmatpush.msrb.mxu0 %v1105_v63 }
 0x3f6   :  { %v1218_v38 = vclamps-f32 %v894_v36, 1.0  ;;  %1121 = vmatpush.msra.mxu3 %v1088_v32  ;;  %v1098_v36 = vld [vmem:[%s2256_s3 + $0x88] sm:$0xff] }
 0x3f7   :  { %1144 = vmatpush.msrb.mxu0 %v1104_v37 }
 0x3f8   :  { %v982_v52 = vadd.f32 1.0, %v1218_v38  ;;  %1122 = vmatpush.msra.mxu3 %v1087_v26  ;;  %v1097_v38 = vld [vmem:[%s2256_s3 + $0x80] sm:$0xff]  ;;  %s1291_s3 = smov [#allocation2]  }
 0x3f9   :  { %1145 = vmatpush.msrb.mxu0 %v1103_v22  ;;  %s1165_s25 = sshll.u32 %s1291_s3, 4  ;;  %s1166_s25 = int_to_ptr.vmem [resolvable:$true] %s1165_s25 }
 0x3fa   :  { %v990_v61 = vmul.f32 %v982_v52, %v646_v55  ;;  %1123 = vmatpush.msra.mxu3 %v1086_v48  ;;  %v1193_v55 = vsel %vm459_vm13, 1.0, %v1290_v8  ;;  %v1194_v52 = vsel %vm460_vm2, 1.0, %v1290_v8 }
 0x3fb   :  { %1146 = vmatpush.msrb.mxu0 %v1102_v49 }
 0x3fc   :  { %v1006_v51 = vmul.f32 %v998_v62, %v990_v61  ;;  %1124 = vmatpush.msra.mxu3 %v1085_v47 }
 0x3fd   :  { %1147 = vmatpush.msrb.mxu0 %v1101_v23 }
 0x3fe   :  { %1036 = vperm.xlu2 %1236, %v1006_v51   ;;  %1125 = vmatpush.msra.mxu3 %v1084_v31 }
 0x3ff   :  { %1148 = vmatpush.msrb.mxu0 %v1100_v24 }
 0x400   :  { %1126 = vmatpush.msra.mxu3 %v1083_v1 }
 0x401   :  { %1149 = vmatpush.msrb.mxu0 %v1099_v46 }
 0x402   :  { %1127 = vmatpush.msra.mxu3 %v1082_v15 }
 0x403   :  { %1150 = vmatpush.msrb.mxu0 %v1098_v36 }
 0x404   :  { %1128 = vmatpush.msra.mxu3 %v1081_v45 }
 0x405   :  { %1151 = vmatpush.msrb.mxu0 %v1097_v38 }
 0x414   :  { %v1012_v50 = vpop.permute.xlu0 %1011 }
 0x415   :  { %v1049_v60 = vmul.f32 %v1181_v19, %v1012_v50  ;;  %v1050_v34 = vmul.f32 %v1182_v59, %v1012_v50  ;;  %v1192_v50 = vsel %vm2270_vm8, 1.0, %v1290_v8 }
 0x431   :  { %v1032_v0 = vpop.permute.xlu2 %1031 }
 0x432   :  { %v1057_v21 = vmul.f32 %v1189_v28, %v1032_v0  ;;  %v1058_v44 = vmul.f32 %v1190_v13, %v1032_v0 }
 0x436   :  { %v1022_v9 = vpop.permute.xlu1 %1021 }
 0x437   :  { %v1053_v7 = vmul.f32 %v1185_v11, %v1022_v9  ;;  %v1054_v54 = vmul.f32 %v1186_v35, %v1022_v9  ;;  %v1195_v35 = vsel %vm2271_vm14, 1.0, %v1290_v8  ;;  %v1196_v9 = vsel %vm2272_vm15, 1.0, %v1290_v8 }
 0x439   :  { %v1069_v39 = vadd.f32 %v1053_v7, %v1049_v60  ;;  %v1070_v2 = vadd.f32 %v1054_v54, %v1050_v34 }
 0x43b   :  { %v1074_v41 = vadd.f32 %v1070_v2, %v1058_v44  ;;  %v1073_v14 = vadd.f32 %v1069_v39, %v1057_v21 }
 0x43e   :  { %v1017_v57 = vpop.permute.xlu1 %1016 }
 0x43f   :  { %v1051_v12 = vmul.f32 %v1183_v53, %v1017_v57  ;;  %v1052_v16 = vmul.f32 %v1184_v58, %v1017_v57 }
 0x458   :  { %v1037_v30 = vpop.permute.xlu2 %1036 }
 0x459   :  { %v1059_v59 = vmul.f32 %v1191_v56, %v1037_v30  ;;  %v1060_v0 = vmul.f32 %v1192_v50, %v1037_v30 }
 0x45d   :  { %v1042_v62 = vpop.permute.xlu0 %1041 }
 0x45e   :  { %v1061_v61 = vmul.f32 %v1193_v55, %v1042_v62  ;;  %v1062_v51 = vmul.f32 %v1194_v52, %v1042_v62 }
 0x460   :  { %v1078_v33 = vadd.f32 %v1074_v41, %v1062_v51  ;;  %v1077_v27 = vadd.f32 %v1073_v14, %v1061_v61 }
 0x462   :  { %1129 = vmatmul.f32.vlgmr.msra.gmra.mxu3 %v1077_v27  ;;  %1152 = vmatmul.f32.vlgmr.msrb.gmra.mxu0 %v1078_v33 }
 0x463   :  { %v1047_v19 = vpop.permute.xlu1 %1046 }
 0x464   :  { %v1063_v60 = vmul.f32 %v1195_v35, %v1047_v19  ;;  %v1064_v34 = vmul.f32 %v1196_v9, %v1047_v19 }
 0x465   :  { %v1027_v25 = vpop.permute.xlu0 %1026 }
 0x466   :  { %v1055_v17 = vmul.f32 %v1187_v43, %v1027_v25  ;;  %v1056_v6 = vmul.f32 %v1188_v5, %v1027_v25 }
 0x468   :  { %v1071_v10 = vadd.f32 %v1055_v17, %v1051_v12  ;;  %v1072_v11 = vadd.f32 %v1056_v6, %v1052_v16 }
 0x46a   :  { %v1075_v7 = vadd.f32 %v1071_v10, %v1059_v59  ;;  %v1076_v29 = vadd.f32 %v1072_v11, %v1060_v0 }
 0x46c   :  { %v1079_v54 = vadd.f32 %v1075_v7, %v1063_v60  ;;  %v1080_v28 = vadd.f32 %v1076_v29, %v1064_v34 }
 0x46e   :  { %1132 = vmatmul.f32.gmra.mxu3 %v1079_v54  ;;  %1155 = vmatmul.f32.gmra.mxu0 %v1080_v28 }
 0x4df   :  { %v1153_v13 = vpop.f32.mrf.mxu0 }
 0x4e5   :  { %v1130_v21 = vpop.f32.mrf.mxu3 }
 0x4e6   :  { %v1154_v44 = vadd.f32 %v1153_v13, %v1130_v21 }
 0x4e8   :  { %1159 = vst.msk [vmem:[#allocation2] sm:$0xff] %vm2273_vm9, %v1154_v44 }
 0x4eb   :  { %v1156_v4 = vpop.f32.mrf.mxu0 }
 0x4f1   :  { %v1133_v42 = vpop.f32.mrf.mxu3 }
 0x4f2   :  { %v1157_v3 = vadd.f32 %v1156_v4, %v1133_v42 }
 0x4f4   :  { %1160 = vst.msk [vmem:[#allocation2 + $0x8] sm:$0xff] %vm2274_vm10, %v1157_v3 }
 0x4f5   :  { %1173 = dma.vmem_to_hbm [thread:$0]  %s1166_s25, 256, %s1168_s1, [#allocation3], %s1292_s28, %s1292_s28, %s1293_s29  }
 0x4f6   :  { %1279 = dma.done.wait [#allocation3], 256  }
 0x4f7   :  { %1280 = vsyncadd [#allocation3], 4294967040 }
 0x4f8   :  { %1178 = vsyncpa [#allocation3], 1 }

</bundles_post_ra>
